<compile_context>
chip_gen: v7x
topology: tpu7x:2x2x1
jax: 0.10.0
libtpu: 0.0.40
codegen_flags: <defaults>
</compile_context>

<pallas_src>
import math

import jax
import jax.numpy as jnp
from jax import lax
from jax.experimental import pallas as pl
from jax.experimental.pallas import tpu as pltpu

NUM_LAYERS = 4   # nn.TransformerEncoder(num_layers=4)
NHEAD = 8        # nn.TransformerEncoderLayer(nhead=8)
LN_EPS = 1e-5    # PyTorch LayerNorm default eps


# ---------------------------------------------------------------------------
# in-kernel math helpers (traced inside the Pallas kernel body)
# ---------------------------------------------------------------------------
def _erf_f32(x):
    # Abramowitz & Stegun 7.1.26 polynomial erf, max |err| ~1.5e-7 (float32-accurate).
    p = 0.3275911
    a1, a2, a3, a4, a5 = (0.254829592, -0.284496736, 1.421413741,
                          -1.453152027, 1.061405429)
    s = jnp.where(x >= 0.0, 1.0, -1.0)
    ax = jnp.abs(x)
    t = 1.0 / (1.0 + p * ax)
    poly = ((((a5 * t + a4) * t + a3) * t + a2) * t + a1) * t
    return s * (1.0 - poly * jnp.exp(-ax * ax))


def _gelu_exact(x):
    # TODO(synk): lax.erf has no guaranteed Mosaic lowering; nn.GELU()'s exact erf GELU is
    # reproduced with an f32-accurate polynomial erf (error ~1e-7, below bf16 matmul noise).
    return 0.5 * x * (1.0 + _erf_f32(x * 0.7071067811865476))


def _layernorm(x, gamma, beta):
    mean = jnp.mean(x, axis=-1, keepdims=True)
    var = jnp.mean(jnp.square(x - mean), axis=-1, keepdims=True)
    return (x - mean) * lax.rsqrt(var + LN_EPS) * gamma + beta


def _softmax_last(x):
    m = jnp.max(x, axis=-1, keepdims=True)
    e = jnp.exp(x - m)
    # EUP approximate reciprocal instead of a VALU divide.
    return e * pl.reciprocal(jnp.sum(e, axis=-1, keepdims=True), approx=True)


def _mm(a_f32, w_bf16):
    # bf16 MXU inputs, f32 accumulation.
    return jnp.dot(a_f32.astype(jnp.bfloat16), w_bf16,
                   preferred_element_type=jnp.float32)


# ---------------------------------------------------------------------------
# the Pallas kernel: one (batch, layer) grid step per invocation
# ---------------------------------------------------------------------------
def image_network_kernel(
    x_ref,                        # (1, S, D)
    n1g_ref, n1b_ref,             # (1, D)           norm1 (over image_dim)
    w_in_ref, b_in_ref,           # (D, H) bf16 / (1, H)
    w_out_ref, b_out_ref,         # (H, H) bf16 / (1, H)
    wq_ref, bq_ref,               # (1, H, H) bf16 / (1, 1, H)   (q-scale pre-folded)
    wk_ref, bk_ref,               # (1, H, H) bf16 / (1, 1, H)
    wv_ref, bv_ref,               # (1, H, H) bf16 / (1, 1, H)
    wo_ref, bo_ref,               # (1, H, H) bf16 / (1, 1, H)
    wff1_ref, bff1_ref,           # (1, H, Dff) bf16 / (1, 1, Dff)
    wff2_ref, bff2_ref,           # (1, Dff, H) bf16 / (1, 1, H)
    ln1g_ref, ln1b_ref,           # (1, 1, H)
    ln2g_ref, ln2b_ref,           # (1, 1, H)
    n2g_ref, n2b_ref,             # (1, H)           final norm2 (over hidden_dim)
    out_ref,                      # (1, S, H)
    h_ref,                        # VMEM scratch (S, H) f32: residual stream across layer steps
):
    l = pl.program_id(1)
    S = x_ref.shape[1]
    H = h_ref.shape[1]
    hd = H // NHEAD

    # ---- stem: norm1 -> linear -> (dropout=identity) -> GELU -> linear_out, at layer step 0 ----
    @pl.when(l == 0)
    def _stem():
        xs = _layernorm(x_ref[0], n1g_ref[...], n1b_ref[...])
        hs = _mm(xs, w_in_ref[...]) + b_in_ref[...]
        hs = _gelu_exact(hs)
        hs = _mm(hs, w_out_ref[...]) + b_out_ref[...]
        h_ref[...] = hs

    h = h_ref[...]                                           # (S, H) f32

    # ---- self-attention (post-norm layer; q scale folded into w_q/b_q host-side) ----
    q = _mm(h, wq_ref[0]) + bq_ref[0]                        # (S, H)
    k = _mm(h, wk_ref[0]) + bk_ref[0]
    v = _mm(h, wv_ref[0]) + bv_ref[0]

    # head split via static lane slices + stack on a new leading (head) axis.
    # TODO(synk): a lane-splitting reshape (S,H)->(S,NHEAD,hd) + transpose would avoid the
    # slice/stack, but static lane slices are the proven-lowering path when hd < 128.
    def _heads(t):
        return jnp.stack([t[:, i * hd:(i + 1) * hd] for i in range(NHEAD)], axis=0)

    qh = _heads(q).astype(jnp.bfloat16)                      # (NHEAD, S, hd)
    kh = _heads(k).astype(jnp.bfloat16)
    vh = _heads(v).astype(jnp.bfloat16)

    sc = jnp.einsum("hqd,hkd->hqk", qh, kh,
                    preferred_element_type=jnp.float32)      # (NHEAD, S, S)
    pr = _softmax_last(sc)
    ao = jnp.einsum("hqk,hkd->hqd", pr.astype(jnp.bfloat16), vh,
                    preferred_element_type=jnp.float32)      # (NHEAD, S, hd)

    attn = jnp.concatenate([ao[i] for i in range(NHEAD)], axis=-1)   # (S, H)
    attn = _mm(attn, wo_ref[0]) + bo_ref[0]
    h = _layernorm(h + attn, ln1g_ref[0], ln1b_ref[0])

    # ---- feed-forward (dim_feedforward = image_dim, activation = relu) ----
    f = _mm(h, wff1_ref[0]) + bff1_ref[0]
    f = jnp.maximum(f, 0.0)
    f = _mm(f, wff2_ref[0]) + bff2_ref[0]
    h = _layernorm(h + f, ln2g_ref[0], ln2b_ref[0])
    h_ref[...] = h

    # ---- final norm2, stored once per batch block at the last layer step ----
    @pl.when(l == pl.num_programs(1) - 1)
    def _final():
        out_ref[0] = _layernorm(h, n2g_ref[...], n2b_ref[...])


# ---------------------------------------------------------------------------
# wrapper: parameter prep (bf16 weights, folded q scale), grid & specs
# ---------------------------------------------------------------------------
def image_network_forward(x, params):
    B, S, D = x.shape
    H = params["w_in"].shape[1]
    Dff = params["w_ff1"].shape[2]
    L = params["w_q"].shape[0]
    hd = H // NHEAD
    q_scale = 1.0 / math.sqrt(hd)
    bf16 = jnp.bfloat16

    # One-time host/XLA-side parameter prep (outside the kernel):
    #   * fold 1/sqrt(head_dim) into w_q / b_q
    #   * cast matmul weights to bf16 (MXU inputs); biases & LN params stay f32
    w_in = params["w_in"].astype(bf16)
    w_out = params["w_out"].astype(bf16)
    w_q = (params["w_q"] * q_scale).astype(bf16)
    b_q = params["b_q"] * q_scale
    w_k = params["w_k"].astype(bf16)
    w_v = params["w_v"].astype(bf16)
    w_o = params["w_o"].astype(bf16)
    w_ff1 = params["w_ff1"].astype(bf16)
    w_ff2 = params["w_ff2"].astype(bf16)

    inputs = (
        x,
        params["n1_g"], params["n1_b"],
        w_in, params["b_in"],
        w_out, params["b_out"],
        w_q, b_q,
        w_k, params["b_k"],
        w_v, params["b_v"],
        w_o, params["b_o"],
        w_ff1, params["b_ff1"],
        w_ff2, params["b_ff2"],
        params["ln1_g"], params["ln1_b"],
        params["ln2_g"], params["ln2_b"],
        params["n2_g"], params["n2_b"],
    )

    def batch_map(b, l):
        return (b, 0, 0)

    def layer3_map(b, l):
        return (l, 0, 0)

    def const2_map(b, l):
        return (0, 0)

    in_specs = [
        pl.BlockSpec((1, S, D), batch_map),          # x
        pl.BlockSpec((1, D), const2_map),            # n1_g
        pl.BlockSpec((1, D), const2_map),            # n1_b
        pl.BlockSpec((D, H), const2_map),            # w_in
        pl.BlockSpec((1, H), const2_map),            # b_in
        pl.BlockSpec((H, H), const2_map),            # w_out
        pl.BlockSpec((1, H), const2_map),            # b_out
        pl.BlockSpec((1, H, H), layer3_map),         # w_q  (streamed per layer)
        pl.BlockSpec((1, 1, H), layer3_map),         # b_q
        pl.BlockSpec((1, H, H), layer3_map),         # w_k
        pl.BlockSpec((1, 1, H), layer3_map),         # b_k
        pl.BlockSpec((1, H, H), layer3_map),         # w_v
        pl.BlockSpec((1, 1, H), layer3_map),         # b_v
        pl.BlockSpec((1, H, H), layer3_map),         # w_o
        pl.BlockSpec((1, 1, H), layer3_map),         # b_o
        pl.BlockSpec((1, H, Dff), layer3_map),       # w_ff1
        pl.BlockSpec((1, 1, Dff), layer3_map),       # b_ff1
        pl.BlockSpec((1, Dff, H), layer3_map),       # w_ff2
        pl.BlockSpec((1, 1, H), layer3_map),         # b_ff2
        pl.BlockSpec((1, 1, H), layer3_map),         # ln1_g
        pl.BlockSpec((1, 1, H), layer3_map),         # ln1_b
        pl.BlockSpec((1, 1, H), layer3_map),         # ln2_g
        pl.BlockSpec((1, 1, H), layer3_map),         # ln2_b
        pl.BlockSpec((1, H), const2_map),            # n2_g
        pl.BlockSpec((1, H), const2_map),            # n2_b
    ]
    out_spec = pl.BlockSpec((1, S, H), batch_map)

    # advisory cost estimate for XLA scheduling around the custom call
    flops = (2 * B * S * (D * H + H * H)
             + L * (8 * B * S * H * H + 4 * B * S * S * H + 4 * B * S * H * Dff))
    transcendentals = B * S * H + L * B * NHEAD * S * S
    bytes_accessed = int(sum(a.size * a.dtype.itemsize for a in inputs) + B * S * H * 4)

    # VMEM budget: resident globals + double-buffered single-layer weights + activation blocks.
    global_bytes = int(sum(a.size * a.dtype.itemsize for a in inputs[:7])
                       + sum(a.size * a.dtype.itemsize for a in inputs[-2:]))
    layer_bytes = int(sum(a.size * a.dtype.itemsize for a in inputs[7:-2])) // L
    act_bytes = (S * D + 2 * S * H) * 4
    need = global_bytes + 2 * layer_bytes + 4 * act_bytes + (4 << 20)
    vmem_limit = int(min(96 << 20, max(32 << 20, need)))

    return pl.pallas_call(
        image_network_kernel,
        out_shape=jax.ShapeDtypeStruct((B, S, H), jnp.float32),
        grid_spec=pltpu.PrefetchScalarGridSpec(
            num_scalar_prefetch=0,
            grid=(B, L),
            in_specs=in_specs,
            out_specs=out_spec,
            scratch_shapes=[pltpu.VMEM((S, H), jnp.float32)],
        ),
        compiler_params=pltpu.CompilerParams(
            dimension_semantics=("parallel", "arbitrary"),
            vmem_limit_bytes=vmem_limit,
        ),
        cost_estimate=pl.CostEstimate(
            flops=flops,
            transcendentals=transcendentals,
            bytes_accessed=bytes_accessed,
        ),
    )(*inputs)


# ---------------------------------------------------------------------------
# deterministic synthetic parameters (shapes implied by image_network.__init__)
# ---------------------------------------------------------------------------
def init_params(key, image_dim, hidden_dim, num_layers=NUM_LAYERS):
    D, H, L = image_dim, hidden_dim, num_layers
    ks = jax.random.split(key, 16)

    def w(k, shape, fan_in):
        return jax.random.normal(k, shape, jnp.float32) / math.sqrt(fan_in)

    def b(k, shape):
        return 0.02 * jax.random.normal(k, shape, jnp.float32)

    return dict(
        n1_g=jnp.ones((1, D), jnp.float32), n1_b=jnp.zeros((1, D), jnp.float32),
        w_in=w(ks[0], (D, H), D),            b_in=b(ks[1], (1, H)),
        w_out=w(ks[2], (H, H), H),           b_out=b(ks[3], (1, H)),
        w_q=w(ks[4], (L, H, H), H),          b_q=b(ks[5], (L, 1, H)),
        w_k=w(ks[6], (L, H, H), H),          b_k=b(ks[7], (L, 1, H)),
        w_v=w(ks[8], (L, H, H), H),          b_v=b(ks[9], (L, 1, H)),
        w_o=w(ks[10], (L, H, H), H),         b_o=b(ks[11], (L, 1, H)),
        w_ff1=w(ks[12], (L, H, D), H),       b_ff1=b(ks[13], (L, 1, D)),
        w_ff2=w(ks[14], (L, D, H), D),       b_ff2=b(ks[15], (L, 1, H)),
        ln1_g=jnp.ones((L, 1, H), jnp.float32), ln1_b=jnp.zeros((L, 1, H), jnp.float32),
        ln2_g=jnp.ones((L, 1, H), jnp.float32), ln2_b=jnp.zeros((L, 1, H), jnp.float32),
        n2_g=jnp.ones((1, H), jnp.float32), n2_b=jnp.zeros((1, H), jnp.float32),
    )


# ---------------------------------------------------------------------------
# pure-JAX reference (torch-eval semantics); matmul_dtype=bf16 mirrors the kernel's MXU casts
# ---------------------------------------------------------------------------
def image_network_reference(x, params, matmul_dtype=jnp.float32):
    def mm(a, w):
        return jnp.dot(a.astype(matmul_dtype), w.astype(matmul_dtype),
                       preferred_element_type=jnp.float32)

    def ln(z, g, b):
        m = jnp.mean(z, -1, keepdims=True)
        v = jnp.mean((z - m) ** 2, -1, keepdims=True)
        return (z - m) / jnp.sqrt(v + LN_EPS) * g + b

    B, S, _ = x.shape
    H = params["w_in"].shape[1]
    hd = H // NHEAD
    q_scale = 1.0 / math.sqrt(hd)

    h = ln(x, params["n1_g"], params["n1_b"])
    h = jax.nn.gelu(mm(h, params["w_in"]) + params["b_in"], approximate=False)
    h = mm(h, params["w_out"]) + params["b_out"]
    for l in range(NUM_LAYERS):
        q = mm(h, params["w_q"][l] * q_scale) + params["b_q"][l] * q_scale
        k = mm(h, params["w_k"][l]) + params["b_k"][l]
        v = mm(h, params["w_v"][l]) + params["b_v"][l]
        qh = q.reshape(B, S, NHEAD, hd).transpose(0, 2, 1, 3)
        kh = k.reshape(B, S, NHEAD, hd).transpose(0, 2, 1, 3)
        vh = v.reshape(B, S, NHEAD, hd).transpose(0, 2, 1, 3)
        sc = jnp.einsum('bhqd,bhkd->bhqk', qh.astype(matmul_dtype), kh.astype(matmul_dtype),
                        preferred_element_type=jnp.float32)
        pr = jax.nn.softmax(sc, axis=-1)
        at = jnp.einsum('bhqk,bhkd->bhqd', pr.astype(matmul_dtype), vh.astype(matmul_dtype),
                        preferred_element_type=jnp.float32)
        at = at.transpose(0, 2, 1, 3).reshape(B, S, H)
        at = mm(at, params["w_o"][l]) + params["b_o"][l]
        h = ln(h + at, params["ln1_g"][l], params["ln1_b"][l])
        f = jnp.maximum(mm(h, params["w_ff1"][l]) + params["b_ff1"][l], 0.0)
        f = mm(f, params["w_ff2"][l]) + params["b_ff2"][l]
        h = ln(h + f, params["ln2_g"][l], params["ln2_b"][l])
    return ln(h, params["n2_g"], params["n2_b"])


if __name__ == "__main__":
    # small shapes consistent with the module: (batch, seq, image_dim), hidden_dim divisible by nhead=8
    B, S, IMAGE_DIM, HIDDEN_DIM = 2, 8, 16, 32

    key = jax.random.PRNGKey(0)
    kx, kp = jax.random.split(key)
    x = jax.random.normal(kx, (B, S, IMAGE_DIM), jnp.float32)
    params = init_params(kp, IMAGE_DIM, HIDDEN_DIM)

    out = jax.block_until_ready(image_network_forward(x, params))

    assert out.shape == (B, S, HIDDEN_DIM)
    assert bool(jnp.all(jnp.isfinite(out)))

    # tight check vs a reference using the same bf16-at-the-matmul math
    ref_bf16 = jax.block_until_ready(image_network_reference(x, params, jnp.bfloat16))
    tight = float(jnp.max(jnp.abs(out - ref_bf16)))
    assert tight < 5e-2, f"mismatch vs bf16-matmul reference: {tight}"

    # loose check vs the pure-f32 reference (bounds the bf16 quantization effect)
    ref_f32 = jax.block_until_ready(image_network_reference(x, params, jnp.float32))
    loose = float(jnp.max(jnp.abs(out - ref_f32)))
    assert loose < 2.5e-1, f"mismatch vs f32 reference: {loose}"

    print("KERNEL_OK")
</pallas_src>

<mosaic_0001>
module attributes {stable_mosaic.version = 11 : i64} {
  func.func @image_network_kernel(%arg0: i32, %arg1: i32, %arg2: memref<1x8x16xf32, #tpu.memory_space<vmem>>, %arg3: memref<1x16xf32, #tpu.memory_space<vmem>>, %arg4: memref<1x16xf32, #tpu.memory_space<vmem>>, %arg5: memref<16x32xbf16, #tpu.memory_space<vmem>>, %arg6: memref<1x32xf32, #tpu.memory_space<vmem>>, %arg7: memref<32x32xbf16, #tpu.memory_space<vmem>>, %arg8: memref<1x32xf32, #tpu.memory_space<vmem>>, %arg9: memref<1x32x32xbf16, #tpu.memory_space<vmem>>, %arg10: memref<1x1x32xf32, #tpu.memory_space<vmem>>, %arg11: memref<1x32x32xbf16, #tpu.memory_space<vmem>>, %arg12: memref<1x1x32xf32, #tpu.memory_space<vmem>>, %arg13: memref<1x32x32xbf16, #tpu.memory_space<vmem>>, %arg14: memref<1x1x32xf32, #tpu.memory_space<vmem>>, %arg15: memref<1x32x32xbf16, #tpu.memory_space<vmem>>, %arg16: memref<1x1x32xf32, #tpu.memory_space<vmem>>, %arg17: memref<1x32x16xbf16, #tpu.memory_space<vmem>>, %arg18: memref<1x1x16xf32, #tpu.memory_space<vmem>>, %arg19: memref<1x16x32xbf16, #tpu.memory_space<vmem>>, %arg20: memref<1x1x32xf32, #tpu.memory_space<vmem>>, %arg21: memref<1x1x32xf32, #tpu.memory_space<vmem>>, %arg22: memref<1x1x32xf32, #tpu.memory_space<vmem>>, %arg23: memref<1x1x32xf32, #tpu.memory_space<vmem>>, %arg24: memref<1x1x32xf32, #tpu.memory_space<vmem>>, %arg25: memref<1x32xf32, #tpu.memory_space<vmem>>, %arg26: memref<1x32xf32, #tpu.memory_space<vmem>>, %arg27: memref<1x8x32xf32, #tpu.memory_space<vmem>>, %arg28: memref<8x32xf32, #tpu.memory_space<vmem>>) attributes {dimension_semantics = [#tpu.dimension_semantics<parallel>, #tpu.dimension_semantics<arbitrary>], iteration_bounds = array<i64: 2, 4>, scalar_prefetch = 0 : i64, scratch_operands = 1 : i64, tpu.core_type = #tpu.core_type<tc>, window_params = [{transform_indices = @transform_0, window_bounds = array<i64: 1, 8, 16>}, {pipeline_mode = #tpu.pipeline_mode<synchronous>, transform_indices = @transform_1, window_bounds = array<i64: 1, 16>}, {pipeline_mode = #tpu.pipeline_mode<synchronous>, transform_indices = @transform_2, window_bounds = array<i64: 1, 16>}, {pipeline_mode = #tpu.pipeline_mode<synchronous>, transform_indices = @transform_3, window_bounds = array<i64: 16, 32>}, {pipeline_mode = #tpu.pipeline_mode<synchronous>, transform_indices = @transform_4, window_bounds = array<i64: 1, 32>}, {pipeline_mode = #tpu.pipeline_mode<synchronous>, transform_indices = @transform_5, window_bounds = array<i64: 32, 32>}, {pipeline_mode = #tpu.pipeline_mode<synchronous>, transform_indices = @transform_6, window_bounds = array<i64: 1, 32>}, {transform_indices = @transform_7, window_bounds = array<i64: 1, 32, 32>}, {transform_indices = @transform_8, window_bounds = array<i64: 1, 1, 32>}, {transform_indices = @transform_9, window_bounds = array<i64: 1, 32, 32>}, {transform_indices = @transform_10, window_bounds = array<i64: 1, 1, 32>}, {transform_indices = @transform_11, window_bounds = array<i64: 1, 32, 32>}, {transform_indices = @transform_12, window_bounds = array<i64: 1, 1, 32>}, {transform_indices = @transform_13, window_bounds = array<i64: 1, 32, 32>}, {transform_indices = @transform_14, window_bounds = array<i64: 1, 1, 32>}, {transform_indices = @transform_15, window_bounds = array<i64: 1, 32, 16>}, {transform_indices = @transform_16, window_bounds = array<i64: 1, 1, 16>}, {transform_indices = @transform_17, window_bounds = array<i64: 1, 16, 32>}, {transform_indices = @transform_18, window_bounds = array<i64: 1, 1, 32>}, {transform_indices = @transform_19, window_bounds = array<i64: 1, 1, 32>}, {transform_indices = @transform_20, window_bounds = array<i64: 1, 1, 32>}, {transform_indices = @transform_21, window_bounds = array<i64: 1, 1, 32>}, {transform_indices = @transform_22, window_bounds = array<i64: 1, 1, 32>}, {pipeline_mode = #tpu.pipeline_mode<synchronous>, transform_indices = @transform_23, window_bounds = array<i64: 1, 32>}, {pipeline_mode = #tpu.pipeline_mode<synchronous>, transform_indices = @transform_24, window_bounds = array<i64: 1, 32>}, {transform_indices = @transform_25, window_bounds = array<i64: 1, 8, 32>}]} {
    %c0_i32 = arith.constant 0 : i32
    %0 = arith.cmpi eq, %arg1, %c0_i32 : i32
    %1 = arith.extui %0 : i1 to i32
    %c0_i32_0 = arith.constant 0 : i32
    %2 = arith.cmpi ne, %1, %c0_i32_0 : i32
    scf.if %2 {
      %c0_73 = arith.constant 0 : index
      %c0_74 = arith.constant 0 : index
      %c0_75 = arith.constant 0 : index
      %196 = vector.load %arg2[%c0_73, %c0_74, %c0_75] : memref<1x8x16xf32, #tpu.memory_space<vmem>>, vector<1x8x16xf32>
      %197 = vector.shape_cast %196 : vector<1x8x16xf32> to vector<8x16xf32>
      %c0_76 = arith.constant 0 : index
      %c0_77 = arith.constant 0 : index
      %198 = vector.load %arg3[%c0_76, %c0_77] : memref<1x16xf32, #tpu.memory_space<vmem>>, vector<1x16xf32>
      %c0_78 = arith.constant 0 : index
      %c0_79 = arith.constant 0 : index
      %199 = vector.load %arg4[%c0_78, %c0_79] : memref<1x16xf32, #tpu.memory_space<vmem>>, vector<1x16xf32>
      %cst_80 = arith.constant dense<0.000000e+00> : vector<8xf32>
      %200 = vector.multi_reduction <add>, %197, %cst_80 [1] : vector<8x16xf32> to vector<8xf32>
      %201 = vector.shape_cast %200 : vector<8xf32> to vector<8x1xf32>
      %cst_81 = arith.constant 1.600000e+01 : f32
      %202 = vector.broadcast %cst_81 : f32 to vector<8x1xf32>
      %203 = arith.divf %201, %202 : vector<8x1xf32>
      %204 = vector.broadcast %203 : vector<8x1xf32> to vector<8x16xf32>
      %205 = arith.subf %197, %204 : vector<8x16xf32>
      %206 = arith.mulf %205, %205 : vector<8x16xf32>
      %cst_82 = arith.constant dense<0.000000e+00> : vector<8xf32>
      %207 = vector.multi_reduction <add>, %206, %cst_82 [1] : vector<8x16xf32> to vector<8xf32>
      %208 = vector.shape_cast %207 : vector<8xf32> to vector<8x1xf32>
      %cst_83 = arith.constant 1.600000e+01 : f32
      %209 = vector.broadcast %cst_83 : f32 to vector<8x1xf32>
      %210 = arith.divf %208, %209 : vector<8x1xf32>
      %211 = vector.broadcast %203 : vector<8x1xf32> to vector<8x16xf32>
      %212 = arith.subf %197, %211 : vector<8x16xf32>
      %cst_84 = arith.constant 9.99999974E-6 : f32
      %213 = vector.broadcast %cst_84 : f32 to vector<8x1xf32>
      %214 = arith.addf %210, %213 : vector<8x1xf32>
      %215 = math.rsqrt %214 : vector<8x1xf32>
      %216 = vector.broadcast %215 : vector<8x1xf32> to vector<8x16xf32>
      %217 = arith.mulf %212, %216 : vector<8x16xf32>
      %218 = vector.broadcast %198 : vector<1x16xf32> to vector<8x16xf32>
      %219 = arith.mulf %217, %218 : vector<8x16xf32>
      %220 = vector.broadcast %199 : vector<1x16xf32> to vector<8x16xf32>
      %221 = arith.addf %219, %220 : vector<8x16xf32>
      %c0_85 = arith.constant 0 : index
      %c0_86 = arith.constant 0 : index
      %222 = vector.load %arg5[%c0_85, %c0_86] : memref<16x32xbf16, #tpu.memory_space<vmem>>, vector<16x32xbf16>
      %223 = arith.truncf %221 : vector<8x16xf32> to vector<8x16xbf16>
      %cst_87 = arith.constant dense<0.000000e+00> : vector<8x32xf32>
      %224 = tpu.matmul %223, %222, %cst_87 {dimension_numbers = #tpu.dot_dimension_numbers<[1], [0], [0], [1], [0, 0, 1, 1], [], []>} : vector<8x16xbf16>, vector<16x32xbf16>, vector<8x32xf32> -> vector<8x32xf32>
      %c0_88 = arith.constant 0 : index
      %c0_89 = arith.constant 0 : index
      %225 = vector.load %arg6[%c0_88, %c0_89] : memref<1x32xf32, #tpu.memory_space<vmem>>, vector<1x32xf32>
      %226 = vector.broadcast %225 : vector<1x32xf32> to vector<8x32xf32>
      %227 = arith.addf %224, %226 : vector<8x32xf32>
      %cst_90 = arith.constant 5.000000e-01 : f32
      %228 = vector.broadcast %cst_90 : f32 to vector<8x32xf32>
      %229 = arith.mulf %228, %227 : vector<8x32xf32>
      %cst_91 = arith.constant 0.707106769 : f32
      %230 = vector.broadcast %cst_91 : f32 to vector<8x32xf32>
      %231 = arith.mulf %227, %230 : vector<8x32xf32>
      %cst_92 = arith.constant 0.000000e+00 : f32
      %232 = vector.broadcast %cst_92 : f32 to vector<8x32xf32>
      %233 = arith.cmpf oge, %231, %232 : vector<8x32xf32>
      %cst_93 = arith.constant 1.000000e+00 : f32
      %cst_94 = arith.constant -1.000000e+00 : f32
      %234 = vector.broadcast %cst_93 : f32 to vector<8x32xf32>
      %235 = vector.broadcast %cst_94 : f32 to vector<8x32xf32>
      %236 = arith.select %233, %234, %235 : vector<8x32xi1>, vector<8x32xf32>
      %237 = math.absf %231 : vector<8x32xf32>
      %cst_95 = arith.constant 0.327591091 : f32
      %238 = vector.broadcast %cst_95 : f32 to vector<8x32xf32>
      %239 = arith.mulf %238, %237 : vector<8x32xf32>
      %cst_96 = arith.constant 1.000000e+00 : f32
      %240 = vector.broadcast %cst_96 : f32 to vector<8x32xf32>
      %241 = arith.addf %240, %239 : vector<8x32xf32>
      %cst_97 = arith.constant 1.000000e+00 : f32
      %242 = vector.broadcast %cst_97 : f32 to vector<8x32xf32>
      %243 = arith.divf %242, %241 : vector<8x32xf32>
      %cst_98 = arith.constant 1.06140542 : f32
      %244 = vector.broadcast %cst_98 : f32 to vector<8x32xf32>
      %245 = arith.mulf %244, %243 : vector<8x32xf32>
      %cst_99 = arith.constant -1.45315206 : f32
      %246 = vector.broadcast %cst_99 : f32 to vector<8x32xf32>
      %247 = arith.addf %245, %246 : vector<8x32xf32>
      %248 = arith.mulf %247, %243 : vector<8x32xf32>
      %cst_100 = arith.constant 1.42141378 : f32
      %249 = vector.broadcast %cst_100 : f32 to vector<8x32xf32>
      %250 = arith.addf %248, %249 : vector<8x32xf32>
      %251 = arith.mulf %250, %243 : vector<8x32xf32>
      %cst_101 = arith.constant -0.284496725 : f32
      %252 = vector.broadcast %cst_101 : f32 to vector<8x32xf32>
      %253 = arith.addf %251, %252 : vector<8x32xf32>
      %254 = arith.mulf %253, %243 : vector<8x32xf32>
      %cst_102 = arith.constant 0.254829586 : f32
      %255 = vector.broadcast %cst_102 : f32 to vector<8x32xf32>
      %256 = arith.addf %254, %255 : vector<8x32xf32>
      %257 = arith.mulf %256, %243 : vector<8x32xf32>
      %cst_103 = arith.constant 0.000000e+00 : f32
      %258 = vector.broadcast %cst_103 : f32 to vector<8x32xf32>
      %259 = arith.subf %258, %237 : vector<8x32xf32>
      %260 = arith.mulf %259, %237 : vector<8x32xf32>
      %261 = math.exp %260 : vector<8x32xf32>
      %262 = arith.mulf %257, %261 : vector<8x32xf32>
      %cst_104 = arith.constant 1.000000e+00 : f32
      %263 = vector.broadcast %cst_104 : f32 to vector<8x32xf32>
      %264 = arith.subf %263, %262 : vector<8x32xf32>
      %265 = arith.mulf %236, %264 : vector<8x32xf32>
      %cst_105 = arith.constant 1.000000e+00 : f32
      %266 = vector.broadcast %cst_105 : f32 to vector<8x32xf32>
      %267 = arith.addf %266, %265 : vector<8x32xf32>
      %268 = arith.mulf %229, %267 : vector<8x32xf32>
      %c0_106 = arith.constant 0 : index
      %c0_107 = arith.constant 0 : index
      %269 = vector.load %arg7[%c0_106, %c0_107] : memref<32x32xbf16, #tpu.memory_space<vmem>>, vector<32x32xbf16>
      %270 = arith.truncf %268 : vector<8x32xf32> to vector<8x32xbf16>
      %cst_108 = arith.constant dense<0.000000e+00> : vector<8x32xf32>
      %271 = tpu.matmul %270, %269, %cst_108 {dimension_numbers = #tpu.dot_dimension_numbers<[1], [0], [0], [1], [0, 0, 1, 1], [], []>} : vector<8x32xbf16>, vector<32x32xbf16>, vector<8x32xf32> -> vector<8x32xf32>
      %c0_109 = arith.constant 0 : index
      %c0_110 = arith.constant 0 : index
      %272 = vector.load %arg8[%c0_109, %c0_110] : memref<1x32xf32, #tpu.memory_space<vmem>>, vector<1x32xf32>
      %273 = vector.broadcast %272 : vector<1x32xf32> to vector<8x32xf32>
      %274 = arith.addf %271, %273 : vector<8x32xf32>
      %c0_111 = arith.constant 0 : index
      %c0_112 = arith.constant 0 : index
      %275 = vector.load %arg28[%c0_111, %c0_112] : memref<8x32xf32, #tpu.memory_space<vmem>>, vector<8x32xf32>
      tpu.vector_store %arg28[%c0_111, %c0_112], %274 {strides = array<i32>} : memref<8x32xf32, #tpu.memory_space<vmem>>, vector<8x32xf32>,
    } else {
    }
    %c0 = arith.constant 0 : index
    %c0_1 = arith.constant 0 : index
    %3 = vector.load %arg28[%c0, %c0_1] : memref<8x32xf32, #tpu.memory_space<vmem>>, vector<8x32xf32>
    %c0_2 = arith.constant 0 : index
    %c0_3 = arith.constant 0 : index
    %c0_4 = arith.constant 0 : index
    %4 = vector.load %arg9[%c0_2, %c0_3, %c0_4] : memref<1x32x32xbf16, #tpu.memory_space<vmem>>, vector<1x32x32xbf16>
    %5 = vector.shape_cast %4 : vector<1x32x32xbf16> to vector<32x32xbf16>
    %6 = arith.truncf %3 : vector<8x32xf32> to vector<8x32xbf16>
    %cst = arith.constant dense<0.000000e+00> : vector<8x32xf32>
    %7 = tpu.matmul %6, %5, %cst {dimension_numbers = #tpu.dot_dimension_numbers<[1], [0], [0], [1], [0, 0, 1, 1], [], []>} : vector<8x32xbf16>, vector<32x32xbf16>, vector<8x32xf32> -> vector<8x32xf32>
    %c0_5 = arith.constant 0 : index
    %c0_6 = arith.constant 0 : index
    %c0_7 = arith.constant 0 : index
    %8 = vector.load %arg10[%c0_5, %c0_6, %c0_7] : memref<1x1x32xf32, #tpu.memory_space<vmem>>, vector<1x1x32xf32>
    %9 = vector.shape_cast %8 : vector<1x1x32xf32> to vector<1x32xf32>
    %10 = vector.broadcast %9 : vector<1x32xf32> to vector<8x32xf32>
    %11 = arith.addf %7, %10 : vector<8x32xf32>
    %c0_8 = arith.constant 0 : index
    %c0_9 = arith.constant 0 : index
    %c0_10 = arith.constant 0 : index
    %12 = vector.load %arg11[%c0_8, %c0_9, %c0_10] : memref<1x32x32xbf16, #tpu.memory_space<vmem>>, vector<1x32x32xbf16>
    %13 = vector.shape_cast %12 : vector<1x32x32xbf16> to vector<32x32xbf16>
    %14 = arith.truncf %3 : vector<8x32xf32> to vector<8x32xbf16>
    %cst_11 = arith.constant dense<0.000000e+00> : vector<8x32xf32>
    %15 = tpu.matmul %14, %13, %cst_11 {dimension_numbers = #tpu.dot_dimension_numbers<[1], [0], [0], [1], [0, 0, 1, 1], [], []>} : vector<8x32xbf16>, vector<32x32xbf16>, vector<8x32xf32> -> vector<8x32xf32>
    %c0_12 = arith.constant 0 : index
    %c0_13 = arith.constant 0 : index
    %c0_14 = arith.constant 0 : index
    %16 = vector.load %arg12[%c0_12, %c0_13, %c0_14] : memref<1x1x32xf32, #tpu.memory_space<vmem>>, vector<1x1x32xf32>
    %17 = vector.shape_cast %16 : vector<1x1x32xf32> to vector<1x32xf32>
    %18 = vector.broadcast %17 : vector<1x32xf32> to vector<8x32xf32>
    %19 = arith.addf %15, %18 : vector<8x32xf32>
    %c0_15 = arith.constant 0 : index
    %c0_16 = arith.constant 0 : index
    %c0_17 = arith.constant 0 : index
    %20 = vector.load %arg13[%c0_15, %c0_16, %c0_17] : memref<1x32x32xbf16, #tpu.memory_space<vmem>>, vector<1x32x32xbf16>
    %21 = vector.shape_cast %20 : vector<1x32x32xbf16> to vector<32x32xbf16>
    %22 = arith.truncf %3 : vector<8x32xf32> to vector<8x32xbf16>
    %cst_18 = arith.constant dense<0.000000e+00> : vector<8x32xf32>
    %23 = tpu.matmul %22, %21, %cst_18 {dimension_numbers = #tpu.dot_dimension_numbers<[1], [0], [0], [1], [0, 0, 1, 1], [], []>} : vector<8x32xbf16>, vector<32x32xbf16>, vector<8x32xf32> -> vector<8x32xf32>
    %c0_19 = arith.constant 0 : index
    %c0_20 = arith.constant 0 : index
    %c0_21 = arith.constant 0 : index
    %24 = vector.load %arg14[%c0_19, %c0_20, %c0_21] : memref<1x1x32xf32, #tpu.memory_space<vmem>>, vector<1x1x32xf32>
    %25 = vector.shape_cast %24 : vector<1x1x32xf32> to vector<1x32xf32>
    %26 = vector.broadcast %25 : vector<1x32xf32> to vector<8x32xf32>
    %27 = arith.addf %23, %26 : vector<8x32xf32>
    %28 = vector.extract_strided_slice %11 {offsets = [0, 0], sizes = [8, 4], strides = [1, 1]} : vector<8x32xf32> to vector<8x4xf32>
    %29 = vector.extract_strided_slice %11 {offsets = [0, 4], sizes = [8, 4], strides = [1, 1]} : vector<8x32xf32> to vector<8x4xf32>
    %30 = vector.extract_strided_slice %11 {offsets = [0, 8], sizes = [8, 4], strides = [1, 1]} : vector<8x32xf32> to vector<8x4xf32>
    %31 = vector.extract_strided_slice %11 {offsets = [0, 12], sizes = [8, 4], strides = [1, 1]} : vector<8x32xf32> to vector<8x4xf32>
    %32 = vector.extract_strided_slice %11 {offsets = [0, 16], sizes = [8, 4], strides = [1, 1]} : vector<8x32xf32> to vector<8x4xf32>
    %33 = vector.extract_strided_slice %11 {offsets = [0, 20], sizes = [8, 4], strides = [1, 1]} : vector<8x32xf32> to vector<8x4xf32>
    %34 = vector.extract_strided_slice %11 {offsets = [0, 24], sizes = [8, 4], strides = [1, 1]} : vector<8x32xf32> to vector<8x4xf32>
    %35 = vector.extract_strided_slice %11 {offsets = [0, 28], sizes = [8, 4], strides = [1, 1]} : vector<8x32xf32> to vector<8x4xf32>
    %36 = vector.shape_cast %28 : vector<8x4xf32> to vector<1x8x4xf32>
    %37 = vector.shape_cast %29 : vector<8x4xf32> to vector<1x8x4xf32>
    %38 = vector.shape_cast %30 : vector<8x4xf32> to vector<1x8x4xf32>
    %39 = vector.shape_cast %31 : vector<8x4xf32> to vector<1x8x4xf32>
    %40 = vector.shape_cast %32 : vector<8x4xf32> to vector<1x8x4xf32>
    %41 = vector.shape_cast %33 : vector<8x4xf32> to vector<1x8x4xf32>
    %42 = vector.shape_cast %34 : vector<8x4xf32> to vector<1x8x4xf32>
    %43 = vector.shape_cast %35 : vector<8x4xf32> to vector<1x8x4xf32>
    %44 = tpu.concatenate %36, %37, %38, %39, %40, %41, %42, %43 in 0 : vector<1x8x4xf32>, vector<1x8x4xf32>, vector<1x8x4xf32>, vector<1x8x4xf32>, vector<1x8x4xf32>, vector<1x8x4xf32>, vector<1x8x4xf32>, vector<1x8x4xf32> -> vector<8x8x4xf32>
    %45 = arith.truncf %44 : vector<8x8x4xf32> to vector<8x8x4xbf16>
    %46 = vector.extract_strided_slice %19 {offsets = [0, 0], sizes = [8, 4], strides = [1, 1]} : vector<8x32xf32> to vector<8x4xf32>
    %47 = vector.extract_strided_slice %19 {offsets = [0, 4], sizes = [8, 4], strides = [1, 1]} : vector<8x32xf32> to vector<8x4xf32>
    %48 = vector.extract_strided_slice %19 {offsets = [0, 8], sizes = [8, 4], strides = [1, 1]} : vector<8x32xf32> to vector<8x4xf32>
    %49 = vector.extract_strided_slice %19 {offsets = [0, 12], sizes = [8, 4], strides = [1, 1]} : vector<8x32xf32> to vector<8x4xf32>
    %50 = vector.extract_strided_slice %19 {offsets = [0, 16], sizes = [8, 4], strides = [1, 1]} : vector<8x32xf32> to vector<8x4xf32>
    %51 = vector.extract_strided_slice %19 {offsets = [0, 20], sizes = [8, 4], strides = [1, 1]} : vector<8x32xf32> to vector<8x4xf32>
    %52 = vector.extract_strided_slice %19 {offsets = [0, 24], sizes = [8, 4], strides = [1, 1]} : vector<8x32xf32> to vector<8x4xf32>
    %53 = vector.extract_strided_slice %19 {offsets = [0, 28], sizes = [8, 4], strides = [1, 1]} : vector<8x32xf32> to vector<8x4xf32>
    %54 = vector.shape_cast %46 : vector<8x4xf32> to vector<1x8x4xf32>
    %55 = vector.shape_cast %47 : vector<8x4xf32> to vector<1x8x4xf32>
    %56 = vector.shape_cast %48 : vector<8x4xf32> to vector<1x8x4xf32>
    %57 = vector.shape_cast %49 : vector<8x4xf32> to vector<1x8x4xf32>
    %58 = vector.shape_cast %50 : vector<8x4xf32> to vector<1x8x4xf32>
    %59 = vector.shape_cast %51 : vector<8x4xf32> to vector<1x8x4xf32>
    %60 = vector.shape_cast %52 : vector<8x4xf32> to vector<1x8x4xf32>
    %61 = vector.shape_cast %53 : vector<8x4xf32> to vector<1x8x4xf32>
    %62 = tpu.concatenate %54, %55, %56, %57, %58, %59, %60, %61 in 0 : vector<1x8x4xf32>, vector<1x8x4xf32>, vector<1x8x4xf32>, vector<1x8x4xf32>, vector<1x8x4xf32>, vector<1x8x4xf32>, vector<1x8x4xf32>, vector<1x8x4xf32> -> vector<8x8x4xf32>
    %63 = arith.truncf %62 : vector<8x8x4xf32> to vector<8x8x4xbf16>
    %64 = vector.extract_strided_slice %27 {offsets = [0, 0], sizes = [8, 4], strides = [1, 1]} : vector<8x32xf32> to vector<8x4xf32>
    %65 = vector.extract_strided_slice %27 {offsets = [0, 4], sizes = [8, 4], strides = [1, 1]} : vector<8x32xf32> to vector<8x4xf32>
    %66 = vector.extract_strided_slice %27 {offsets = [0, 8], sizes = [8, 4], strides = [1, 1]} : vector<8x32xf32> to vector<8x4xf32>
    %67 = vector.extract_strided_slice %27 {offsets = [0, 12], sizes = [8, 4], strides = [1, 1]} : vector<8x32xf32> to vector<8x4xf32>
    %68 = vector.extract_strided_slice %27 {offsets = [0, 16], sizes = [8, 4], strides = [1, 1]} : vector<8x32xf32> to vector<8x4xf32>
    %69 = vector.extract_strided_slice %27 {offsets = [0, 20], sizes = [8, 4], strides = [1, 1]} : vector<8x32xf32> to vector<8x4xf32>
    %70 = vector.extract_strided_slice %27 {offsets = [0, 24], sizes = [8, 4], strides = [1, 1]} : vector<8x32xf32> to vector<8x4xf32>
    %71 = vector.extract_strided_slice %27 {offsets = [0, 28], sizes = [8, 4], strides = [1, 1]} : vector<8x32xf32> to vector<8x4xf32>
    %72 = vector.shape_cast %64 : vector<8x4xf32> to vector<1x8x4xf32>
    %73 = vector.shape_cast %65 : vector<8x4xf32> to vector<1x8x4xf32>
    %74 = vector.shape_cast %66 : vector<8x4xf32> to vector<1x8x4xf32>
    %75 = vector.shape_cast %67 : vector<8x4xf32> to vector<1x8x4xf32>
    %76 = vector.shape_cast %68 : vector<8x4xf32> to vector<1x8x4xf32>
    %77 = vector.shape_cast %69 : vector<8x4xf32> to vector<1x8x4xf32>
    %78 = vector.shape_cast %70 : vector<8x4xf32> to vector<1x8x4xf32>
    %79 = vector.shape_cast %71 : vector<8x4xf32> to vector<1x8x4xf32>
    %80 = tpu.concatenate %72, %73, %74, %75, %76, %77, %78, %79 in 0 : vector<1x8x4xf32>, vector<1x8x4xf32>, vector<1x8x4xf32>, vector<1x8x4xf32>, vector<1x8x4xf32>, vector<1x8x4xf32>, vector<1x8x4xf32>, vector<1x8x4xf32> -> vector<8x8x4xf32>
    %81 = arith.truncf %80 : vector<8x8x4xf32> to vector<8x8x4xbf16>
    "tpu.trace_start"() <{level = 10 : i32, message = "hqd,hkd->hqk"}> : () -> ()
    %cst_22 = arith.constant dense<0.000000e+00> : vector<8x8x8xf32>
    %82 = tpu.matmul %45, %63, %cst_22 {dimension_numbers = #tpu.dot_dimension_numbers<[2], [2], [1], [1], [0, 0, 0, 1, 1, 1], [0], [0]>} : vector<8x8x4xbf16>, vector<8x8x4xbf16>, vector<8x8x8xf32> -> vector<8x8x8xf32>
    "tpu.trace_stop"() : () -> ()
    %cst_23 = arith.constant dense<0xFF800000> : vector<8x8xf32>
    %83 = vector.multi_reduction <maximumf>, %82, %cst_23 [2] : vector<8x8x8xf32> to vector<8x8xf32>
    %84 = vector.shape_cast %83 : vector<8x8xf32> to vector<8x8x1xf32>
    %85 = vector.broadcast %84 : vector<8x8x1xf32> to vector<8x8x8xf32>
    %86 = arith.subf %82, %85 : vector<8x8x8xf32>
    %87 = math.exp %86 : vector<8x8x8xf32>
    %cst_24 = arith.constant dense<0.000000e+00> : vector<8x8xf32>
    %88 = vector.multi_reduction <add>, %87, %cst_24 [2] : vector<8x8x8xf32> to vector<8x8xf32>
    %89 = vector.shape_cast %88 : vector<8x8xf32> to vector<8x8x1xf32>
    %90 = tpu.reciprocal %89 {approx = true} : vector<8x8x1xf32> -> vector<8x8x1xf32>
    %91 = vector.broadcast %90 : vector<8x8x1xf32> to vector<8x8x8xf32>
    %92 = arith.mulf %87, %91 : vector<8x8x8xf32>
    %93 = arith.truncf %92 : vector<8x8x8xf32> to vector<8x8x8xbf16>
    "tpu.trace_start"() <{level = 10 : i32, message = "hqk,hkd->hqd"}> : () -> ()
    %cst_25 = arith.constant dense<0.000000e+00> : vector<8x8x4xf32>
    %94 = tpu.matmul %93, %81, %cst_25 {dimension_numbers = #tpu.dot_dimension_numbers<[2], [1], [1], [2], [0, 0, 0, 1, 1, 2], [0], [0]>} : vector<8x8x8xbf16>, vector<8x8x4xbf16>, vector<8x8x4xf32> -> vector<8x8x4xf32>
    "tpu.trace_stop"() : () -> ()
    %95 = vector.extract_strided_slice %94 {offsets = [0, 0, 0], sizes = [1, 8, 4], strides = [1, 1, 1]} : vector<8x8x4xf32> to vector<1x8x4xf32>
    %96 = vector.shape_cast %95 : vector<1x8x4xf32> to vector<8x4xf32>
    %97 = vector.extract_strided_slice %94 {offsets = [1, 0, 0], sizes = [1, 8, 4], strides = [1, 1, 1]} : vector<8x8x4xf32> to vector<1x8x4xf32>
    %98 = vector.shape_cast %97 : vector<1x8x4xf32> to vector<8x4xf32>
    %99 = vector.extract_strided_slice %94 {offsets = [2, 0, 0], sizes = [1, 8, 4], strides = [1, 1, 1]} : vector<8x8x4xf32> to vector<1x8x4xf32>
    %100 = vector.shape_cast %99 : vector<1x8x4xf32> to vector<8x4xf32>
    %101 = vector.extract_strided_slice %94 {offsets = [3, 0, 0], sizes = [1, 8, 4], strides = [1, 1, 1]} : vector<8x8x4xf32> to vector<1x8x4xf32>
    %102 = vector.shape_cast %101 : vector<1x8x4xf32> to vector<8x4xf32>
    %103 = vector.extract_strided_slice %94 {offsets = [4, 0, 0], sizes = [1, 8, 4], strides = [1, 1, 1]} : vector<8x8x4xf32> to vector<1x8x4xf32>
    %104 = vector.shape_cast %103 : vector<1x8x4xf32> to vector<8x4xf32>
    %105 = vector.extract_strided_slice %94 {offsets = [5, 0, 0], sizes = [1, 8, 4], strides = [1, 1, 1]} : vector<8x8x4xf32> to vector<1x8x4xf32>
    %106 = vector.shape_cast %105 : vector<1x8x4xf32> to vector<8x4xf32>
    %107 = vector.extract_strided_slice %94 {offsets = [6, 0, 0], sizes = [1, 8, 4], strides = [1, 1, 1]} : vector<8x8x4xf32> to vector<1x8x4xf32>
    %108 = vector.shape_cast %107 : vector<1x8x4xf32> to vector<8x4xf32>
    %109 = vector.extract_strided_slice %94 {offsets = [7, 0, 0], sizes = [1, 8, 4], strides = [1, 1, 1]} : vector<8x8x4xf32> to vector<1x8x4xf32>
    %110 = vector.shape_cast %109 : vector<1x8x4xf32> to vector<8x4xf32>
    %111 = tpu.concatenate %96, %98, %100, %102, %104, %106, %108, %110 in 1 : vector<8x4xf32>, vector<8x4xf32>, vector<8x4xf32>, vector<8x4xf32>, vector<8x4xf32>, vector<8x4xf32>, vector<8x4xf32>, vector<8x4xf32> -> vector<8x32xf32>
    %c0_26 = arith.constant 0 : index
    %c0_27 = arith.constant 0 : index
    %c0_28 = arith.constant 0 : index
    %112 = vector.load %arg15[%c0_26, %c0_27, %c0_28] : memref<1x32x32xbf16, #tpu.memory_space<vmem>>, vector<1x32x32xbf16>
    %113 = vector.shape_cast %112 : vector<1x32x32xbf16> to vector<32x32xbf16>
    %114 = arith.truncf %111 : vector<8x32xf32> to vector<8x32xbf16>
    %cst_29 = arith.constant dense<0.000000e+00> : vector<8x32xf32>
    %115 = tpu.matmul %114, %113, %cst_29 {dimension_numbers = #tpu.dot_dimension_numbers<[1], [0], [0], [1], [0, 0, 1, 1], [], []>} : vector<8x32xbf16>, vector<32x32xbf16>, vector<8x32xf32> -> vector<8x32xf32>
    %c0_30 = arith.constant 0 : index
    %c0_31 = arith.constant 0 : index
    %c0_32 = arith.constant 0 : index
    %116 = vector.load %arg16[%c0_30, %c0_31, %c0_32] : memref<1x1x32xf32, #tpu.memory_space<vmem>>, vector<1x1x32xf32>
    %117 = vector.shape_cast %116 : vector<1x1x32xf32> to vector<1x32xf32>
    %118 = vector.broadcast %117 : vector<1x32xf32> to vector<8x32xf32>
    %119 = arith.addf %115, %118 : vector<8x32xf32>
    %120 = arith.addf %3, %119 : vector<8x32xf32>
    %c0_33 = arith.constant 0 : index
    %c0_34 = arith.constant 0 : index
    %c0_35 = arith.constant 0 : index
    %121 = vector.load %arg21[%c0_33, %c0_34, %c0_35] : memref<1x1x32xf32, #tpu.memory_space<vmem>>, vector<1x1x32xf32>
    %122 = vector.shape_cast %121 : vector<1x1x32xf32> to vector<1x32xf32>
    %c0_36 = arith.constant 0 : index
    %c0_37 = arith.constant 0 : index
    %c0_38 = arith.constant 0 : index
    %123 = vector.load %arg22[%c0_36, %c0_37, %c0_38] : memref<1x1x32xf32, #tpu.memory_space<vmem>>, vector<1x1x32xf32>
    %124 = vector.shape_cast %123 : vector<1x1x32xf32> to vector<1x32xf32>
    %cst_39 = arith.constant dense<0.000000e+00> : vector<8xf32>
    %125 = vector.multi_reduction <add>, %120, %cst_39 [1] : vector<8x32xf32> to vector<8xf32>
    %126 = vector.shape_cast %125 : vector<8xf32> to vector<8x1xf32>
    %cst_40 = arith.constant 3.200000e+01 : f32
    %127 = vector.broadcast %cst_40 : f32 to vector<8x1xf32>
    %128 = arith.divf %126, %127 : vector<8x1xf32>
    %129 = vector.broadcast %128 : vector<8x1xf32> to vector<8x32xf32>
    %130 = arith.subf %120, %129 : vector<8x32xf32>
    %131 = arith.mulf %130, %130 : vector<8x32xf32>
    %cst_41 = arith.constant dense<0.000000e+00> : vector<8xf32>
    %132 = vector.multi_reduction <add>, %131, %cst_41 [1] : vector<8x32xf32> to vector<8xf32>
    %133 = vector.shape_cast %132 : vector<8xf32> to vector<8x1xf32>
    %cst_42 = arith.constant 3.200000e+01 : f32
    %134 = vector.broadcast %cst_42 : f32 to vector<8x1xf32>
    %135 = arith.divf %133, %134 : vector<8x1xf32>
    %136 = vector.broadcast %128 : vector<8x1xf32> to vector<8x32xf32>
    %137 = arith.subf %120, %136 : vector<8x32xf32>
    %cst_43 = arith.constant 9.99999974E-6 : f32
    %138 = vector.broadcast %cst_43 : f32 to vector<8x1xf32>
    %139 = arith.addf %135, %138 : vector<8x1xf32>
    %140 = math.rsqrt %139 : vector<8x1xf32>
    %141 = vector.broadcast %140 : vector<8x1xf32> to vector<8x32xf32>
    %142 = arith.mulf %137, %141 : vector<8x32xf32>
    %143 = vector.broadcast %122 : vector<1x32xf32> to vector<8x32xf32>
    %144 = arith.mulf %142, %143 : vector<8x32xf32>
    %145 = vector.broadcast %124 : vector<1x32xf32> to vector<8x32xf32>
    %146 = arith.addf %144, %145 : vector<8x32xf32>
    %c0_44 = arith.constant 0 : index
    %c0_45 = arith.constant 0 : index
    %c0_46 = arith.constant 0 : index
    %147 = vector.load %arg17[%c0_44, %c0_45, %c0_46] : memref<1x32x16xbf16, #tpu.memory_space<vmem>>, vector<1x32x16xbf16>
    %148 = vector.shape_cast %147 : vector<1x32x16xbf16> to vector<32x16xbf16>
    %149 = arith.truncf %146 : vector<8x32xf32> to vector<8x32xbf16>
    %cst_47 = arith.constant dense<0.000000e+00> : vector<8x16xf32>
    %150 = tpu.matmul %149, %148, %cst_47 {dimension_numbers = #tpu.dot_dimension_numbers<[1], [0], [0], [1], [0, 0, 1, 1], [], []>} : vector<8x32xbf16>, vector<32x16xbf16>, vector<8x16xf32> -> vector<8x16xf32>
    %c0_48 = arith.constant 0 : index
    %c0_49 = arith.constant 0 : index
    %c0_50 = arith.constant 0 : index
    %151 = vector.load %arg18[%c0_48, %c0_49, %c0_50] : memref<1x1x16xf32, #tpu.memory_space<vmem>>, vector<1x1x16xf32>
    %152 = vector.shape_cast %151 : vector<1x1x16xf32> to vector<1x16xf32>
    %153 = vector.broadcast %152 : vector<1x16xf32> to vector<8x16xf32>
    %154 = arith.addf %150, %153 : vector<8x16xf32>
    %cst_51 = arith.constant 0.000000e+00 : f32
    %155 = vector.broadcast %cst_51 : f32 to vector<8x16xf32>
    %156 = arith.maximumf %154, %155 : vector<8x16xf32>
    %c0_52 = arith.constant 0 : index
    %c0_53 = arith.constant 0 : index
    %c0_54 = arith.constant 0 : index
    %157 = vector.load %arg19[%c0_52, %c0_53, %c0_54] : memref<1x16x32xbf16, #tpu.memory_space<vmem>>, vector<1x16x32xbf16>
    %158 = vector.shape_cast %157 : vector<1x16x32xbf16> to vector<16x32xbf16>
    %159 = arith.truncf %156 : vector<8x16xf32> to vector<8x16xbf16>
    %cst_55 = arith.constant dense<0.000000e+00> : vector<8x32xf32>
    %160 = tpu.matmul %159, %158, %cst_55 {dimension_numbers = #tpu.dot_dimension_numbers<[1], [0], [0], [1], [0, 0, 1, 1], [], []>} : vector<8x16xbf16>, vector<16x32xbf16>, vector<8x32xf32> -> vector<8x32xf32>
    %c0_56 = arith.constant 0 : index
    %c0_57 = arith.constant 0 : index
    %c0_58 = arith.constant 0 : index
    %161 = vector.load %arg20[%c0_56, %c0_57, %c0_58] : memref<1x1x32xf32, #tpu.memory_space<vmem>>, vector<1x1x32xf32>
    %162 = vector.shape_cast %161 : vector<1x1x32xf32> to vector<1x32xf32>
    %163 = vector.broadcast %162 : vector<1x32xf32> to vector<8x32xf32>
    %164 = arith.addf %160, %163 : vector<8x32xf32>
    %165 = arith.addf %146, %164 : vector<8x32xf32>
    %c0_59 = arith.constant 0 : index
    %c0_60 = arith.constant 0 : index
    %c0_61 = arith.constant 0 : index
    %166 = vector.load %arg23[%c0_59, %c0_60, %c0_61] : memref<1x1x32xf32, #tpu.memory_space<vmem>>, vector<1x1x32xf32>
    %167 = vector.shape_cast %166 : vector<1x1x32xf32> to vector<1x32xf32>
    %c0_62 = arith.constant 0 : index
    %c0_63 = arith.constant 0 : index
    %c0_64 = arith.constant 0 : index
    %168 = vector.load %arg24[%c0_62, %c0_63, %c0_64] : memref<1x1x32xf32, #tpu.memory_space<vmem>>, vector<1x1x32xf32>
    %169 = vector.shape_cast %168 : vector<1x1x32xf32> to vector<1x32xf32>
    %cst_65 = arith.constant dense<0.000000e+00> : vector<8xf32>
    %170 = vector.multi_reduction <add>, %165, %cst_65 [1] : vector<8x32xf32> to vector<8xf32>
    %171 = vector.shape_cast %170 : vector<8xf32> to vector<8x1xf32>
    %cst_66 = arith.constant 3.200000e+01 : f32
    %172 = vector.broadcast %cst_66 : f32 to vector<8x1xf32>
    %173 = arith.divf %171, %172 : vector<8x1xf32>
    %174 = vector.broadcast %173 : vector<8x1xf32> to vector<8x32xf32>
    %175 = arith.subf %165, %174 : vector<8x32xf32>
    %176 = arith.mulf %175, %175 : vector<8x32xf32>
    %cst_67 = arith.constant dense<0.000000e+00> : vector<8xf32>
    %177 = vector.multi_reduction <add>, %176, %cst_67 [1] : vector<8x32xf32> to vector<8xf32>
    %178 = vector.shape_cast %177 : vector<8xf32> to vector<8x1xf32>
    %cst_68 = arith.constant 3.200000e+01 : f32
    %179 = vector.broadcast %cst_68 : f32 to vector<8x1xf32>
    %180 = arith.divf %178, %179 : vector<8x1xf32>
    %181 = vector.broadcast %173 : vector<8x1xf32> to vector<8x32xf32>
    %182 = arith.subf %165, %181 : vector<8x32xf32>
    %cst_69 = arith.constant 9.99999974E-6 : f32
    %183 = vector.broadcast %cst_69 : f32 to vector<8x1xf32>
    %184 = arith.addf %180, %183 : vector<8x1xf32>
    %185 = math.rsqrt %184 : vector<8x1xf32>
    %186 = vector.broadcast %185 : vector<8x1xf32> to vector<8x32xf32>
    %187 = arith.mulf %182, %186 : vector<8x32xf32>
    %188 = vector.broadcast %167 : vector<1x32xf32> to vector<8x32xf32>
    %189 = arith.mulf %187, %188 : vector<8x32xf32>
    %190 = vector.broadcast %169 : vector<1x32xf32> to vector<8x32xf32>
    %191 = arith.addf %189, %190 : vector<8x32xf32>
    %c0_70 = arith.constant 0 : index
    %c0_71 = arith.constant 0 : index
    %192 = vector.load %arg28[%c0_70, %c0_71] : memref<8x32xf32, #tpu.memory_space<vmem>>, vector<8x32xf32>
    tpu.vector_store %arg28[%c0_70, %c0_71], %191 {strides = array<i32>} : memref<8x32xf32, #tpu.memory_space<vmem>>, vector<8x32xf32>,
    %c3_i32 = arith.constant 3 : i32
    %193 = arith.cmpi eq, %arg1, %c3_i32 : i32
    %194 = arith.extui %193 : i1 to i32
    %c0_i32_72 = arith.constant 0 : i32
    %195 = arith.cmpi ne, %194, %c0_i32_72 : i32
    scf.if %195 {
      %c0_73 = arith.constant 0 : index
      %c0_74 = arith.constant 0 : index
      %196 = vector.load %arg25[%c0_73, %c0_74] : memref<1x32xf32, #tpu.memory_space<vmem>>, vector<1x32xf32>
      %c0_75 = arith.constant 0 : index
      %c0_76 = arith.constant 0 : index
      %197 = vector.load %arg26[%c0_75, %c0_76] : memref<1x32xf32, #tpu.memory_space<vmem>>, vector<1x32xf32>
      %cst_77 = arith.constant dense<0.000000e+00> : vector<8xf32>
      %198 = vector.multi_reduction <add>, %191, %cst_77 [1] : vector<8x32xf32> to vector<8xf32>
      %199 = vector.shape_cast %198 : vector<8xf32> to vector<8x1xf32>
      %cst_78 = arith.constant 3.200000e+01 : f32
      %200 = vector.broadcast %cst_78 : f32 to vector<8x1xf32>
      %201 = arith.divf %199, %200 : vector<8x1xf32>
      %202 = vector.broadcast %201 : vector<8x1xf32> to vector<8x32xf32>
      %203 = arith.subf %191, %202 : vector<8x32xf32>
      %204 = arith.mulf %203, %203 : vector<8x32xf32>
      %cst_79 = arith.constant dense<0.000000e+00> : vector<8xf32>
      %205 = vector.multi_reduction <add>, %204, %cst_79 [1] : vector<8x32xf32> to vector<8xf32>
      %206 = vector.shape_cast %205 : vector<8xf32> to vector<8x1xf32>
      %cst_80 = arith.constant 3.200000e+01 : f32
      %207 = vector.broadcast %cst_80 : f32 to vector<8x1xf32>
      %208 = arith.divf %206, %207 : vector<8x1xf32>
      %209 = vector.broadcast %201 : vector<8x1xf32> to vector<8x32xf32>
      %210 = arith.subf %191, %209 : vector<8x32xf32>
      %cst_81 = arith.constant 9.99999974E-6 : f32
      %211 = vector.broadcast %cst_81 : f32 to vector<8x1xf32>
      %212 = arith.addf %208, %211 : vector<8x1xf32>
      %213 = math.rsqrt %212 : vector<8x1xf32>
      %214 = vector.broadcast %213 : vector<8x1xf32> to vector<8x32xf32>
      %215 = arith.mulf %210, %214 : vector<8x32xf32>
      %216 = vector.broadcast %196 : vector<1x32xf32> to vector<8x32xf32>
      %217 = arith.mulf %215, %216 : vector<8x32xf32>
      %218 = vector.broadcast %197 : vector<1x32xf32> to vector<8x32xf32>
      %219 = arith.addf %217, %218 : vector<8x32xf32>
      %c0_82 = arith.constant 0 : index
      %c0_83 = arith.constant 0 : index
      %c0_84 = arith.constant 0 : index
      %220 = vector.load %arg27[%c0_82, %c0_83, %c0_84] : memref<1x8x32xf32, #tpu.memory_space<vmem>>, vector<1x8x32xf32>
      %221 = vector.shape_cast %220 : vector<1x8x32xf32> to vector<8x32xf32>
      %222 = vector.shape_cast %219 : vector<8x32xf32> to vector<1x8x32xf32>
      tpu.vector_store %arg27[%c0_82, %c0_83, %c0_84], %222 {strides = array<i32>} : memref<1x8x32xf32, #tpu.memory_space<vmem>>, vector<1x8x32xf32>,
    } else {
    }
    return
  }
  func.func @transform_0(%arg0: i32, %arg1: i32) -> (i32, i32, i32) {
    %c0_i32 = arith.constant 0 : i32
    %c0_i32_0 = arith.constant 0 : i32
    %c0_i32_1 = arith.constant 0 : i32
    return %arg0, %c0_i32, %c0_i32_0 : i32, i32, i32
  }
  func.func @transform_1(%arg0: i32, %arg1: i32) -> (i32, i32) {
    %c0_i32 = arith.constant 0 : i32
    %c0_i32_0 = arith.constant 0 : i32
    %c0_i32_1 = arith.constant 0 : i32
    return %c0_i32, %c0_i32_0 : i32, i32
  }
  func.func @transform_2(%arg0: i32, %arg1: i32) -> (i32, i32) {
    %c0_i32 = arith.constant 0 : i32
    %c0_i32_0 = arith.constant 0 : i32
    %c0_i32_1 = arith.constant 0 : i32
    return %c0_i32, %c0_i32_0 : i32, i32
  }
  func.func @transform_3(%arg0: i32, %arg1: i32) -> (i32, i32) {
    %c0_i32 = arith.constant 0 : i32
    %c0_i32_0 = arith.constant 0 : i32
    %c0_i32_1 = arith.constant 0 : i32
    return %c0_i32, %c0_i32_0 : i32, i32
  }
  func.func @transform_4(%arg0: i32, %arg1: i32) -> (i32, i32) {
    %c0_i32 = arith.constant 0 : i32
    %c0_i32_0 = arith.constant 0 : i32
    %c0_i32_1 = arith.constant 0 : i32
    return %c0_i32, %c0_i32_0 : i32, i32
  }
  func.func @transform_5(%arg0: i32, %arg1: i32) -> (i32, i32) {
    %c0_i32 = arith.constant 0 : i32
    %c0_i32_0 = arith.constant 0 : i32
    %c0_i32_1 = arith.constant 0 : i32
    return %c0_i32, %c0_i32_0 : i32, i32
  }
  func.func @transform_6(%arg0: i32, %arg1: i32) -> (i32, i32) {
    %c0_i32 = arith.constant 0 : i32
    %c0_i32_0 = arith.constant 0 : i32
    %c0_i32_1 = arith.constant 0 : i32
    return %c0_i32, %c0_i32_0 : i32, i32
  }
  func.func @transform_7(%arg0: i32, %arg1: i32) -> (i32, i32, i32) {
    %c0_i32 = arith.constant 0 : i32
    %c0_i32_0 = arith.constant 0 : i32
    %c0_i32_1 = arith.constant 0 : i32
    return %arg1, %c0_i32, %c0_i32_0 : i32, i32, i32
  }
  func.func @transform_8(%arg0: i32, %arg1: i32) -> (i32, i32, i32) {
    %c0_i32 = arith.constant 0 : i32
    %c0_i32_0 = arith.constant 0 : i32
    %c0_i32_1 = arith.constant 0 : i32
    return %arg1, %c0_i32, %c0_i32_0 : i32, i32, i32
  }
  func.func @transform_9(%arg0: i32, %arg1: i32) -> (i32, i32, i32) {
    %c0_i32 = arith.constant 0 : i32
    %c0_i32_0 = arith.constant 0 : i32
    %c0_i32_1 = arith.constant 0 : i32
    return %arg1, %c0_i32, %c0_i32_0 : i32, i32, i32
  }
  func.func @transform_10(%arg0: i32, %arg1: i32) -> (i32, i32, i32) {
    %c0_i32 = arith.constant 0 : i32
    %c0_i32_0 = arith.constant 0 : i32
    %c0_i32_1 = arith.constant 0 : i32
    return %arg1, %c0_i32, %c0_i32_0 : i32, i32, i32
  }
  func.func @transform_11(%arg0: i32, %arg1: i32) -> (i32, i32, i32) {
    %c0_i32 = arith.constant 0 : i32
    %c0_i32_0 = arith.constant 0 : i32
    %c0_i32_1 = arith.constant 0 : i32
    return %arg1, %c0_i32, %c0_i32_0 : i32, i32, i32
  }
  func.func @transform_12(%arg0: i32, %arg1: i32) -> (i32, i32, i32) {
    %c0_i32 = arith.constant 0 : i32
    %c0_i32_0 = arith.constant 0 : i32
    %c0_i32_1 = arith.constant 0 : i32
    return %arg1, %c0_i32, %c0_i32_0 : i32, i32, i32
  }
  func.func @transform_13(%arg0: i32, %arg1: i32) -> (i32, i32, i32) {
    %c0_i32 = arith.constant 0 : i32
    %c0_i32_0 = arith.constant 0 : i32
    %c0_i32_1 = arith.constant 0 : i32
    return %arg1, %c0_i32, %c0_i32_0 : i32, i32, i32
  }
  func.func @transform_14(%arg0: i32, %arg1: i32) -> (i32, i32, i32) {
    %c0_i32 = arith.constant 0 : i32
    %c0_i32_0 = arith.constant 0 : i32
    %c0_i32_1 = arith.constant 0 : i32
    return %arg1, %c0_i32, %c0_i32_0 : i32, i32, i32
  }
  func.func @transform_15(%arg0: i32, %arg1: i32) -> (i32, i32, i32) {
    %c0_i32 = arith.constant 0 : i32
    %c0_i32_0 = arith.constant 0 : i32
    %c0_i32_1 = arith.constant 0 : i32
    return %arg1, %c0_i32, %c0_i32_0 : i32, i32, i32
  }
  func.func @transform_16(%arg0: i32, %arg1: i32) -> (i32, i32, i32) {
    %c0_i32 = arith.constant 0 : i32
    %c0_i32_0 = arith.constant 0 : i32
    %c0_i32_1 = arith.constant 0 : i32
    return %arg1, %c0_i32, %c0_i32_0 : i32, i32, i32
  }
  func.func @transform_17(%arg0: i32, %arg1: i32) -> (i32, i32, i32) {
    %c0_i32 = arith.constant 0 : i32
    %c0_i32_0 = arith.constant 0 : i32
    %c0_i32_1 = arith.constant 0 : i32
    return %arg1, %c0_i32, %c0_i32_0 : i32, i32, i32
  }
  func.func @transform_18(%arg0: i32, %arg1: i32) -> (i32, i32, i32) {
    %c0_i32 = arith.constant 0 : i32
    %c0_i32_0 = arith.constant 0 : i32
    %c0_i32_1 = arith.constant 0 : i32
    return %arg1, %c0_i32, %c0_i32_0 : i32, i32, i32
  }
  func.func @transform_19(%arg0: i32, %arg1: i32) -> (i32, i32, i32) {
    %c0_i32 = arith.constant 0 : i32
    %c0_i32_0 = arith.constant 0 : i32
    %c0_i32_1 = arith.constant 0 : i32
    return %arg1, %c0_i32, %c0_i32_0 : i32, i32, i32
  }
  func.func @transform_20(%arg0: i32, %arg1: i32) -> (i32, i32, i32) {
    %c0_i32 = arith.constant 0 : i32
    %c0_i32_0 = arith.constant 0 : i32
    %c0_i32_1 = arith.constant 0 : i32
    return %arg1, %c0_i32, %c0_i32_0 : i32, i32, i32
  }
  func.func @transform_21(%arg0: i32, %arg1: i32) -> (i32, i32, i32) {
    %c0_i32 = arith.constant 0 : i32
    %c0_i32_0 = arith.constant 0 : i32
    %c0_i32_1 = arith.constant 0 : i32
    return %arg1, %c0_i32, %c0_i32_0 : i32, i32, i32
  }
  func.func @transform_22(%arg0: i32, %arg1: i32) -> (i32, i32, i32) {
    %c0_i32 = arith.constant 0 : i32
    %c0_i32_0 = arith.constant 0 : i32
    %c0_i32_1 = arith.constant 0 : i32
    return %arg1, %c0_i32, %c0_i32_0 : i32, i32, i32
  }
  func.func @transform_23(%arg0: i32, %arg1: i32) -> (i32, i32) {
    %c0_i32 = arith.constant 0 : i32
    %c0_i32_0 = arith.constant 0 : i32
    %c0_i32_1 = arith.constant 0 : i32
    return %c0_i32, %c0_i32_0 : i32, i32
  }
  func.func @transform_24(%arg0: i32, %arg1: i32) -> (i32, i32) {
    %c0_i32 = arith.constant 0 : i32
    %c0_i32_0 = arith.constant 0 : i32
    %c0_i32_1 = arith.constant 0 : i32
    return %c0_i32, %c0_i32_0 : i32, i32
  }
  func.func @transform_25(%arg0: i32, %arg1: i32) -> (i32, i32, i32) {
    %c0_i32 = arith.constant 0 : i32
    %c0_i32_0 = arith.constant 0 : i32
    %c0_i32_1 = arith.constant 0 : i32
    return %arg0, %c0_i32, %c0_i32_0 : i32, i32, i32
  }
}

</mosaic_0001>

<bundles_post_ra>
// kernel: tpu_custom_call.1
= control target key start
LH: loop header
LB: loop body
LE: loop exit
PB: predicated region body
PF: predicated region fallthrough
CT: control target
= control target key end

     0   :  { %s5677_s0 = inlined_call_operand.hbm [shape: f32[2,8,16], index: 0, kind: input, shape index: {}]   ;;  %s5678_s1 = inlined_call_operand.hbm [shape: f32[1,16], index: 1, kind: input, shape index: {}]   ;;  %s5679_s2 = inlined_call_operand.hbm [shape: f32[1,16], index: 2, kind: input, shape index: {}]   ;;  %s5680_s3 = inlined_call_operand.hbm [shape: bf16[16,32], index: 3, kind: input, shape index: {}]   ;;  %s5681_s4 = inlined_call_operand.hbm [shape: f32[1,32], index: 4, kind: input, shape index: {}]   ;;  %s5682_s5 = inlined_call_operand.hbm [shape: bf16[32,32], index: 5, kind: input, shape index: {}]   ;;  %s5683_s6 = inlined_call_operand.hbm [shape: f32[1,32], index: 6, kind: input, shape index: {}]   ;;  %s5684_s7 = inlined_call_operand.vmem [shape: bf16[4,32,32], index: 7, kind: input, shape index: {}]   ;;  %s5685_s8 = inlined_call_operand.hbm [shape: f32[4,1,32], index: 8, kind: input, shape index: {}]   ;;  %s5686_s9 = inlined_call_operand.vmem [shape: bf16[4,32,32], index: 9, kind: input, shape index: {}]   ;;  %s5687_s10 = inlined_call_operand.hbm [shape: f32[4,1,32], index: 10, kind: input, shape index: {}]   ;;  %s5688_s11 = inlined_call_operand.hbm [shape: bf16[4,32,32], index: 11, kind: input, shape index: {}]   ;;  %s5689_s12 = inlined_call_operand.hbm [shape: f32[4,1,32], index: 12, kind: input, shape index: {}]   ;;  %s5690_s13 = inlined_call_operand.hbm [shape: bf16[4,32,32], index: 13, kind: input, shape index: {}]   ;;  %s5691_s14 = inlined_call_operand.hbm [shape: f32[4,1,32], index: 14, kind: input, shape index: {}]   ;;  %s5692_s15 = inlined_call_operand.vmem [shape: bf16[4,32,16], index: 15, kind: input, shape index: {}]   ;;  %s5693_s16 = inlined_call_operand.hbm [shape: f32[4,1,16], index: 16, kind: input, shape index: {}]   ;;  %s5694_s17 = inlined_call_operand.vmem [shape: bf16[4,16,32], index: 17, kind: input, shape index: {}]   ;;  %s5695_s18 = inlined_call_operand.vmem [shape: f32[4,1,32], index: 18, kind: input, shape index: {}]   ;;  %s5696_s19 = inlined_call_operand.hbm [shape: f32[4,1,32], index: 19, kind: input, shape index: {}]   ;;  %s5697_s20 = inlined_call_operand.vmem [shape: f32[4,1,32], index: 20, kind: input, shape index: {}]   ;;  %s5698_s21 = inlined_call_operand.vmem [shape: f32[4,1,32], index: 21, kind: input, shape index: {}]   ;;  %s5699_s22 = inlined_call_operand.vmem [shape: f32[4,1,32], index: 22, kind: input, shape index: {}]   ;;  %s5700_s23 = inlined_call_operand.vmem [shape: f32[1,32], index: 23, kind: input, shape index: {}]   ;;  %s5701_s24 = inlined_call_operand.vmem [shape: f32[1,32], index: 24, kind: input, shape index: {}]   ;;  %s5702_s25 = inlined_call_operand.hbm [shape: f32[2,8,32], index: 25, kind: output, shape index: {}]  }
   0x1   :  { %5771 = sst [smem:[#allocation56_spill]] %s5677_s0 }
   0x2   :  { %5772 = sst [smem:[#allocation57_spill]] %s5678_s1 }
   0x3   :  { %5773 = sst [smem:[#allocation58_spill]] %s5679_s2 }
   0x4   :  { %5774 = sst [smem:[#allocation59_spill]] %s5680_s3 }
   0x5   :  { %5775 = sst [smem:[#allocation60_spill]] %s5681_s4 }
   0x6   :  { %5776 = sst [smem:[#allocation61_spill]] %s5682_s5 }
   0x7   :  { %5777 = sst [smem:[#allocation62_spill]] %s5683_s6 }
   0x8   :  { %5778 = sst [smem:[#allocation63_spill]] %s5684_s7 }
   0x9   :  { %5779 = sst [smem:[#allocation64_spill]] %s5685_s8 }
   0xa   :  { %5780 = sst [smem:[#allocation65_spill]] %s5686_s9 }
   0xb   :  { %5781 = sst [smem:[#allocation66_spill]] %s5687_s10 }
   0xc   :  { %5782 = sst [smem:[#allocation67_spill]] %s5688_s11 }
   0xd   :  { %5783 = sst [smem:[#allocation68_spill]] %s5689_s12 }
   0xe   :  { %5784 = sst [smem:[#allocation69_spill]] %s5690_s13 }
   0xf   :  { %5785 = sst [smem:[#allocation70_spill]] %s5691_s14 }
  0x10   :  { %5786 = sst [smem:[#allocation71_spill]] %s5692_s15 }
  0x11   :  { %5787 = sst [smem:[#allocation72_spill]] %s5693_s16 }
  0x12   :  { %5788 = sst [smem:[#allocation73_spill]] %s5694_s17 }
  0x13   :  { %5789 = sst [smem:[#allocation74_spill]] %s5695_s18 }
  0x14   :  { %5790 = sst [smem:[#allocation75_spill]] %s5696_s19 }
  0x15   :  { %5791 = sst [smem:[#allocation76_spill]] %s5697_s20 }
  0x16   :  { %5792 = sst [smem:[#allocation77_spill]] %s5698_s21 }
  0x17   :  { %5793 = sst [smem:[#allocation78_spill]] %s5699_s22 }
  0x18   :  { %5794 = sst [smem:[#allocation79_spill]] %s5700_s23 }
  0x19   :  { %5795 = sst [smem:[#allocation80_spill]] %s5701_s24 }
  0x1a   :  { %5796 = sst [smem:[#allocation81_spill]] %s5702_s25 }
  0x1b   :  { %30 = vsyncpa [#allocation4], 0 }
  0x1c   :  { %32 = vsyncpa [#allocation4 + $0x1], 0 }
  0x1d   :  { %33 = vsyncpa [#allocation7], 0 }
  0x1e   :  { %34 = vsyncpa [#allocation10], 0 }
  0x1f   :  { %35 = vsyncpa [#allocation13], 0 }
  0x20   :  { %36 = vsyncpa [#allocation16], 0 }
  0x21   :  { %38 = vsyncpa [#allocation16 + $0x1], 0 }
  0x22   :  { %39 = vsyncpa [#allocation19], 0 }
  0x23   :  { %41 = vsyncpa [#allocation19 + $0x1], 0 }
  0x24   :  { %42 = vsyncpa [#allocation22], 0 }
  0x25   :  { %44 = vsyncpa [#allocation22 + $0x1], 0 }
  0x26   :  { %45 = vsyncpa [#allocation25], 0 }
  0x27   :  { %47 = vsyncpa [#allocation25 + $0x1], 0 }
  0x28   :  { %48 = vsyncpa [#allocation5], 0 }
  0x29   :  { %50 = vsyncpa [#allocation5 + $0x1], 0  ;;  %s4669_s29 = smov 0   ;;  %s4671_s2 = smov 0  }
  0x2a   :  { %s4673_s6 = smov 0   ;;  %s4675_s30 = smov 0  }
  0x2b   :  { %s4677_s7 = smov 0   ;;  %s4679_s3 = smov 0  }
  0x2c   :  { %s4681_s26 = smov 0   ;;  %s4683_s1 = smov 0  }
  0x2d   :  { %s4685_s8 = smov 0   ;;  %s4687_s27 = smov 0  }
  0x2e   :  { %s4689_s4 = smov 0  }
  0x2f LB: > { %5797 = sst [smem:[#allocation37_spill]] %s4464_s2  ;;  %s4725_s28 = sadd.s32 4294967295, %s4500_s4   ;;  %s4500_s4 = sphi %s4689_s4, %s56_s4   ;;  %s4496_s27 = sphi %s4687_s27, %s5916_s27   ;;  %s4492_s8 = sphi %s4685_s8, %s5915_s8   ;;  %s4488_s1 = sphi %s4683_s1, %s5914_s1   ;;  %s4484_s26 = sphi %s4681_s26, %s5913_s26   ;;  %s4480_s3 = sphi %s4679_s3, %s5912_s3   ;;  %s4476_s7 = sphi %s4677_s7, %s5911_s7   ;;  %s4472_s30 = sphi %s4675_s30, %s5910_s30   ;;  %s4468_s6 = sphi %s4673_s6, %s5909_s6   ;;  %s4464_s2 = sphi %s4671_s2, %s5908_s2   ;;  %s4460_s29 = sphi %s4669_s29, %s5907_s29  }
  0x30   : > { %5798 = sst [smem:[#allocation38_spill]] %s4468_s6  ;;  %p3313_p0 = scmp.ge.s32.totalorder %s4500_s4, 1 }
  0x31   : > { %5799 = sst [smem:[#allocation39_spill]] %s4472_s30  ;;  %p5713_p1 = scmp.eq.s32.totalorder %s4725_s28, 0 }
  0x32   : > { %5800 = sst [smem:[#allocation40_spill]] %s4476_s7  ;;  %p709_p2 = scmp.lt.s32.totalorder %s4500_s4, 9 }
  0x33   : > { %5801 = sst [smem:[#allocation41_spill]] %s4480_s3  ;;  %s4502_s5 = smov [#allocation6]  }
  0x34   : > { %5802 = sst [smem:[#allocation42_spill]] %s4484_s26  ;;  %p4730_p3 = pnand %p3313_p0, %p709_p2 }
  0x35   : > { %5803 = sst [smem:[#allocation43_spill]] %s4488_s1  ;;  %s722_s0 = sshll.u32 %s4502_s5, 4  ;;  %s723_s0 = int_to_ptr.vmem [resolvable:$true] %s722_s0 }
  0x36   : > { %5804 = sst [smem:[#allocation44_spill]] %s4492_s8  ;;  %p3674_p4 = pneg %p4730_p3 }
  0x37   : > { %5805 = sst [smem:[#allocation45_spill]] %s4496_s27  ;;  %s4503_s25 = smov [#allocation9]  }
  0x38   : > { %5806 = sst [smem:[#allocation46_spill]] %s4500_s4  ;;  %s743_s1 = sshll.u32 %s4503_s25, 4  ;;  %s4742_s1 = int_to_ptr.vmem [resolvable:$true] %s743_s1 }
  0x39   : > { %s5807_s9 = scalar_select %p4730_p3, 1, 0 }
  0x3a   : > { %p4738_p5 = pnand %p3674_p4, %p5713_p1  ;;  %s4504_s23 = smov [#allocation12]  }
  0x3b   : > { %5808 = sst [smem:[#allocation47_spill]] %s5807_s9  ;;  %s4744_s22 = sshll.u32 %s4504_s23, 4  ;;  %s768_s22 = int_to_ptr.vmem [resolvable:$true] %s4744_s22 }
  0x3c   : > { %s5809_s24 = scalar_select %p4738_p5, 1, 0 }
  0x3d   : > { %s5810_s18 = sld [smem:[#allocation57_spill]]  ;;  %p4754_p7 = pneg %p4738_p5 }
  0x3f   : > { %s5811_s25 = scalar_select %p4754_p7, 1, 0 }
  0x43   : > { %s3912_s5 = scalar_lea.hbm %s5810_s18, 16 }
  0x44   : > { %p3913_p6 = scmp.ne.s32.totalorder %s5810_s18, %s3912_s5  ;;  %p3919_p10 = scmp.lt.u32.totalorder %s3912_s5, %s5810_s18 }
  0x46   : > { %p3915_p8 = pnand %p4754_p7, %p3913_p6 }
  0x48   : > { %p3916_p9 = pneg %p3915_p8 }
  0x4a   : > { %p3921_p11 = pnand %p3919_p10, %p3916_p9 }
  0x4c   : > { %3924 = shalt.err (!%p3921_p11)
}
  0x4d   : > { %s3925_s20 = scalar_lea.vmem %s723_s0, 16  ;;  %s3932_s15 = scalar_lea.vmem %s723_s0, 32 }
  0x4e   : > { %p3926_p12 = scmp.ne.s32.totalorder %s723_s0, %s3925_s20  ;;  %p3933_p2 = scmp.lt.s32.totalorder %s723_s0, %s723_s0 }
  0x4f   : > { %p3934_p4 = scmp.lt.s32.totalorder %s3932_s15, %s3925_s20 }
  0x50   : > { %p3928_p13 = pnand %p3926_p12, %p4754_p7 }
  0x51   : > { %p3935_p1 = por %p3934_p4, %p3933_p2 }
  0x52   : > { %p3929_p0 = pneg %p3928_p13 }
  0x54   : > { %p3936_p3 = pnand %p3935_p1, %p3929_p0 }
  0x56   : > { %3939 = shalt.err (!%p3936_p3)
}
  0x57   : > { %3677 = dma.hbm_to_vmem [thread:$0]  (!%p4738_p5), %s5810_s18, 16, %s723_s0, [#allocation7]  }
  0x58   : > { %s5812_s23 = sld [smem:[#allocation59_spill]] }
  0x5e   : > { %s3940_s9 = scalar_lea.hbm %s5812_s23, 128 }
  0x5f   : > { %p3941_p6 = scmp.ne.s32.totalorder %s5812_s23, %s3940_s9  ;;  %p3947_p1 = scmp.lt.u32.totalorder %s3940_s9, %s5812_s23 }
  0x61   : > { %p3943_p8 = pnand %p3941_p6, %p4754_p7 }
  0x63   : > { %p3944_p9 = pneg %p3943_p8 }
  0x65   : > { %p3949_p3 = pnand %p3947_p1, %p3944_p9 }
  0x67   : > { %3952 = shalt.err (!%p3949_p3)
}
  0x68   : > { %s3953_s0 = scalar_lea.vmem %s4742_s1, 128  ;;  %p3961_p13 = scmp.lt.s32.totalorder %s4742_s1, %s4742_s1 }
  0x69   : > { %p3954_p10 = scmp.ne.s32.totalorder %s4742_s1, %s3953_s0  ;;  %p3962_p0 = scmp.lt.s32.totalorder %s3953_s0, %s3953_s0 }
  0x6b   : > { %p3956_p11 = pnand %p3954_p10, %p4754_p7  ;;  %p3963_p2 = por %p3962_p0, %p3961_p13 }
  0x6d   : > { %p3957_p12 = pneg %p3956_p11 }
  0x6f   : > { %p3964_p4 = pnand %p3963_p2, %p3957_p12 }
  0x71   : > { %3967 = shalt.err (!%p3964_p4)
}
  0x72   : > { %s5720_s14 = smov 64   ;;  %s5722_s19 = smov 4  }
  0x73   : > { %3683 = dma.hbm_to_vmem [thread:$0]  (!%p4738_p5), %s5812_s23, 128, %s4742_s1, [#allocation10], %s5720_s14, %s5720_s14, %s5722_s19  }
  0x74   : > { %s5813_s5 = sld [smem:[#allocation61_spill]] }
  0x7a   : > { %s3968_s20 = scalar_lea.hbm %s5813_s5, 256 }
  0x7b   : > { %p3969_p6 = scmp.ne.s32.totalorder %s5813_s5, %s3968_s20  ;;  %p3975_p1 = scmp.lt.u32.totalorder %s3968_s20, %s5813_s5 }
  0x7d   : > { %p3971_p8 = pnand %p3969_p6, %p4754_p7 }
  0x7f   : > { %p3972_p9 = pneg %p3971_p8 }
  0x81   : > { %p3977_p3 = pnand %p3975_p1, %p3972_p9 }
  0x83   : > { %3980 = shalt.err (!%p3977_p3)
}
  0x84   : > { %s3981_s9 = scalar_lea.vmem %s768_s22, 256  ;;  %p3989_p13 = scmp.lt.s32.totalorder %s768_s22, %s768_s22 }
  0x85   : > { %p3982_p10 = scmp.ne.s32.totalorder %s768_s22, %s3981_s9  ;;  %p3990_p0 = scmp.lt.s32.totalorder %s3981_s9, %s3981_s9 }
  0x87   : > { %p3984_p11 = pnand %p3982_p10, %p4754_p7  ;;  %p3991_p2 = por %p3990_p0, %p3989_p13 }
  0x89   : > { %p3985_p12 = pneg %p3984_p11 }
  0x8b   : > { %p3992_p4 = pnand %p3991_p2, %p3985_p12 }
  0x8d   : > { %3995 = shalt.err (!%p3992_p4)
}
  0x8e   : > { %3689 = dma.hbm_to_vmem [thread:$0]  (!%p4738_p5), %s5813_s5, 256, %s768_s22, [#allocation13], %s5720_s14, %s5720_s14, %s5722_s19  }
  0x8f   : > { %p5729_p6 = scmp.eq.s32.totalorder %s4500_s4, 0  ;;  %p260_p8 = scmp.ne.s32.totalorder %s4468_s6, %s4464_s2 }
  0x90   : > { %p266_p9 = scmp.ne.s32.totalorder %s4464_s2, %s4460_s29  ;;  %p5728_p1 = scmp.lt.s32.totalorder %s4500_s4, 8 }
  0x91   : > { %p262_p3 = por %p260_p8, %p5729_p6  ;;  %s4828_s17 = sand.u32 1, %s4500_s4  }
  0x92   : > { %p5814_p10 = scmp.eq.s32.totalorder %s4725_s28, 0  ;;  %s4837_s26 = sand.u32 1, %s4468_s6  }
  0x93   : > { %s4840_s22 = sshll.u32 %s4492_s8, 4  ;;  %s5817_s15 = sld [smem:[#allocation64_spill]] }
  0x94   : > { %p4832_p11 = por %p266_p9, %p5814_p10  ;;  %s827_s9 = scalar_lea.vmem [#allocation15], %s4837_s26 }
  0x95   : > { %s834_s12 = sshll.u32 %s827_s9, 4  ;;  %p4851_p12 = pnand %p5728_p1, %p262_p3  ;;  %s4855_s12 = int_to_ptr.vmem [resolvable:$true] %s834_s12 }
  0x96   : > { %s5815_s21 = scalar_select %p4832_p11, 1, 0 }
  0x97   : > { %s5818_s18 = scalar_select %p4851_p12, 1, 0 }
  0x98   : > { %5816 = sst [smem:[#allocation48_spill]] %s5815_s21  ;;  %s5737_s14 = scalar_lea.sflag [#allocation16], %s4828_s17 }
  0x99   : > { %s4846_s0 = scalar_lea.hbm %s5817_s15, %s4840_s22  ;;  %p4863_p0 = pneg %p4851_p12 }
  0x9a   : > { %s3996_s19 = scalar_lea.hbm %s4846_s0, 16  ;;  %s4001_s5 = scalar_lea.hbm %s5817_s15, 64 }
  0x9b   : > { %p3997_p13 = scmp.ne.s32.totalorder %s4846_s0, %s3996_s19  ;;  %p4002_p8 = scmp.lt.u32.totalorder %s4846_s0, %s5817_s15 }
  0x9c   : > { %s5819_s20 = scalar_select %p4863_p0, 1, 0 }
  0x9d   : > { %p3999_p2 = pnand %p4863_p0, %p3997_p13  ;;  %p4003_p9 = scmp.lt.u32.totalorder %s4001_s5, %s3996_s19 }
  0x9e   : > { %p4005_p10 = scmp.lt.u32.totalorder %s3996_s19, %s4846_s0 }
  0x9f   : > { %p4000_p4 = pneg %p3999_p2  ;;  %p4004_p3 = por %p4003_p9, %p4002_p8 }
  0xa1   : > { %p4006_p1 = por %p4005_p10, %p4004_p3 }
  0xa3   : > { %p4007_p6 = pnand %p4006_p1, %p4000_p4 }
  0xa5   : > { %4010 = shalt.err (!%p4007_p6)
}
  0xa6   : > { %s4011_s1 = scalar_lea.vmem %s4855_s12, 16  ;;  %s4507_s29 = smov [#allocation15]  }
  0xa7   : > { %p4012_p13 = scmp.ne.s32.totalorder %s4855_s12, %s4011_s1  ;;  %s4016_s9 = sshll.u32 %s4507_s29, 4  ;;  %s4017_s9 = int_to_ptr.vmem [resolvable:$false] %s4016_s9 }
  0xa8   : > { %s4018_s23 = scalar_lea.vmem %s4017_s9, 32  ;;  %p4019_p5 = scmp.lt.s32.totalorder %s4855_s12, %s4017_s9 }
  0xa9   : > { %p4014_p2 = pnand %p4012_p13, %p4863_p0  ;;  %p4020_p7 = scmp.lt.s32.totalorder %s4018_s23, %s4011_s1 }
  0xab   : > { %p4015_p11 = pneg %p4014_p2  ;;  %p4021_p8 = por %p4020_p7, %p4019_p5 }
  0xad   : > { %p4022_p9 = pnand %p4021_p8, %p4015_p11 }
  0xaf   : > { %4025 = shalt.err (!%p4022_p9)
}
  0xb0   : > { %3699 = dma.hbm_to_vmem [thread:$0]  (!%p4851_p12), %s4846_s0, 16, %s4855_s12, %s5737_s14  }
  0xb1   : > { %s3414_s19 = sshll.u32 %s4492_s8, 8  ;;  %s5820_s11 = sld [smem:[#allocation67_spill]] }
  0xb2   : > { %s5821_s29 = sshll.u32 %s4837_s26, 4  ;;  %s5742_s15 = scalar_lea.sflag [#allocation19], %s4828_s17 }
  0xb3   : > { %s870_s9 = scalar_lea.vmem [#allocation18], %s5821_s29 }
  0xb4   : > { %s877_s23 = sshll.u32 %s870_s9, 4  ;;  %s4898_s23 = int_to_ptr.vmem [resolvable:$true] %s877_s23 }
  0xb7   : > { %s4894_s1 = scalar_lea.hbm %s5820_s11, %s3414_s19  ;;  %s4031_s5 = scalar_lea.hbm %s5820_s11, 1024 }
  0xb8   : > { %s4026_s2 = scalar_lea.hbm %s4894_s1, 256  ;;  %p4032_p1 = scmp.lt.u32.totalorder %s4894_s1, %s5820_s11 }
  0xb9   : > { %p4027_p5 = scmp.ne.s32.totalorder %s4894_s1, %s4026_s2  ;;  %p4033_p11 = scmp.lt.u32.totalorder %s4031_s5, %s4026_s2 }
  0xba   : > { %p4035_p3 = scmp.lt.u32.totalorder %s4026_s2, %s4894_s1 }
  0xbb   : > { %p4029_p7 = pnand %p4027_p5, %p4863_p0  ;;  %p4034_p4 = por %p4033_p11, %p4032_p1 }
  0xbd   : > { %p4030_p6 = pneg %p4029_p7  ;;  %p4036_p10 = por %p4035_p3, %p4034_p4 }
  0xbf   : > { %p4037_p13 = pnand %p4036_p10, %p4030_p6 }
  0xc1   : > { %4040 = shalt.err (!%p4037_p13)
}
  0xc2   : > { %s4041_s29 = scalar_lea.vmem %s4898_s23, 256  ;;  %s4508_s9 = smov [#allocation18]  }
  0xc3   : > { %p4042_p2 = scmp.ne.s32.totalorder %s4898_s23, %s4041_s29  ;;  %s4046_s0 = sshll.u32 %s4508_s9, 4  ;;  %s4047_s0 = int_to_ptr.vmem [resolvable:$false] %s4046_s0 }
  0xc4   : > { %s4048_s14 = scalar_lea.vmem %s4047_s0, 512  ;;  %p4049_p5 = scmp.lt.s32.totalorder %s4898_s23, %s4047_s0 }
  0xc5   : > { %p4044_p8 = pnand %p4042_p2, %p4863_p0  ;;  %p4050_p7 = scmp.lt.s32.totalorder %s4048_s14, %s4041_s29 }
  0xc7   : > { %p4045_p9 = pneg %p4044_p8  ;;  %p4051_p1 = por %p4050_p7, %p4049_p5 }
  0xc9   : > { %p4052_p11 = pnand %p4051_p1, %p4045_p9 }
  0xcb   : > { %4055 = shalt.err (!%p4052_p11)
}
  0xcc   : > { %s5822_s2 = smov 4   ;;  %s5823_s12 = smov 64  }
  0xcd   : > { %3705 = dma.hbm_to_vmem [thread:$0]  (!%p4851_p12), %s4894_s1, 256, %s4898_s23, %s5742_s15, %s5823_s12, %s5823_s12, %s5822_s2  }
  0xce   : > { %s5824_s13 = sld [smem:[#allocation69_spill]]  ;;  %s5825_s9 = sshll.u32 %s4837_s26, 4 }
  0xcf   : > { %s908_s0 = scalar_lea.vmem [#allocation21], %s5825_s9  ;;  %s5741_s11 = scalar_lea.sflag [#allocation22], %s4828_s17 }
  0xd0   : > { %s915_s14 = sshll.u32 %s908_s0, 4  ;;  %s4936_s14 = int_to_ptr.vmem [resolvable:$true] %s915_s14 }
  0xd4   : > { %s4932_s29 = scalar_lea.hbm %s5824_s13, %s3414_s19  ;;  %s4061_s19 = scalar_lea.hbm %s5824_s13, 1024 }
  0xd5   : > { %s4056_s10 = scalar_lea.hbm %s4932_s29, 256  ;;  %p4062_p10 = scmp.lt.u32.totalorder %s4932_s29, %s5824_s13 }
  0xd6   : > { %p4057_p6 = scmp.ne.s32.totalorder %s4932_s29, %s4056_s10  ;;  %p4063_p13 = scmp.lt.u32.totalorder %s4061_s19, %s4056_s10 }
  0xd7   : > { %p4065_p8 = scmp.lt.u32.totalorder %s4056_s10, %s4932_s29 }
  0xd8   : > { %p4059_p4 = pnand %p4057_p6, %p4863_p0  ;;  %p4064_p2 = por %p4063_p13, %p4062_p10 }
  0xda   : > { %p4060_p3 = pneg %p4059_p4  ;;  %p4066_p9 = por %p4065_p8, %p4064_p2 }
  0xdc   : > { %p4067_p5 = pnand %p4066_p9, %p4060_p3 }
  0xde   : > { %4070 = shalt.err (!%p4067_p5)
}
  0xdf   : > { %s4071_s9 = scalar_lea.vmem %s4936_s14, 256  ;;  %s4509_s0 = smov [#allocation21]  }
  0xe0   : > { %p4072_p7 = scmp.ne.s32.totalorder %s4936_s14, %s4071_s9  ;;  %s4076_s1 = sshll.u32 %s4509_s0, 4  ;;  %s4077_s1 = int_to_ptr.vmem [resolvable:$false] %s4076_s1 }
  0xe1   : > { %s4078_s23 = scalar_lea.vmem %s4077_s1, 512  ;;  %p4079_p6 = scmp.lt.s32.totalorder %s4936_s14, %s4077_s1 }
  0xe2   : > { %p4074_p1 = pnand %p4072_p7, %p4863_p0  ;;  %p4080_p4 = scmp.lt.s32.totalorder %s4078_s23, %s4071_s9 }
  0xe4   : > { %p4075_p11 = pneg %p4074_p1  ;;  %p4081_p10 = por %p4080_p4, %p4079_p6 }
  0xe6   : > { %p4082_p13 = pnand %p4081_p10, %p4075_p11 }
  0xe8   : > { %4085 = shalt.err (!%p4082_p13)
}
  0xe9   : > { %3711 = dma.hbm_to_vmem [thread:$0]  (!%p4851_p12), %s4932_s29, 256, %s4936_s14, %s5741_s11, %s5823_s12, %s5823_s12, %s5822_s2  }
  0xea   : > { %s5826_s16 = sld [smem:[#allocation72_spill]]  ;;  %s953_s21 = scalar_lea.vmem [#allocation24], %s4837_s26 }
  0xeb   : > { %s960_s9 = sshll.u32 %s953_s21, 4  ;;  %s5745_s0 = scalar_lea.sflag [#allocation25], %s4828_s17  ;;  %s961_s9 = int_to_ptr.vmem [resolvable:$true] %s960_s9 }
  0xf0   : > { %s4969_s5 = scalar_lea.hbm %s5826_s16, %s4840_s22  ;;  %s4091_s12 = scalar_lea.hbm %s5826_s16, 64 }
  0xf1   : > { %s4086_s1 = scalar_lea.hbm %s4969_s5, 16  ;;  %p4092_p9 = scmp.lt.u32.totalorder %s4969_s5, %s5826_s16 }
  0xf2   : > { %p4087_p3 = scmp.ne.s32.totalorder %s4969_s5, %s4086_s1  ;;  %p4093_p5 = scmp.lt.u32.totalorder %s4091_s12, %s4086_s1 }
  0xf3   : > { %p4095_p1 = scmp.lt.u32.totalorder %s4086_s1, %s4969_s5 }
  0xf4   : > { %p4089_p2 = pnand %p4087_p3, %p4863_p0  ;;  %p4094_p7 = por %p4093_p5, %p4092_p9 }
  0xf6   : > { %p4090_p8 = pneg %p4089_p2  ;;  %p4096_p11 = por %p4095_p1, %p4094_p7 }
  0xf8   : > { %p4097_p6 = pnand %p4096_p11, %p4090_p8 }
  0xfa   : > { %4100 = shalt.err (!%p4097_p6)
}
  0xfb   : > { %s4101_s10 = scalar_lea.vmem %s961_s9, 16  ;;  %s4510_s19 = smov [#allocation24]  }
  0xfc   : > { %p4102_p4 = scmp.ne.s32.totalorder %s961_s9, %s4101_s10  ;;  %s4106_s21 = sshll.u32 %s4510_s19, 4  ;;  %s4107_s21 = int_to_ptr.vmem [resolvable:$false] %s4106_s21 }
  0xfd   : > { %s4108_s23 = scalar_lea.vmem %s4107_s21, 32  ;;  %p4109_p3 = scmp.lt.s32.totalorder %s961_s9, %s4107_s21 }
  0xfe   : > { %p4104_p10 = pnand %p4102_p4, %p4863_p0  ;;  %p4110_p2 = scmp.lt.s32.totalorder %s4108_s23, %s4101_s10 }
 0x100   : > { %p4105_p13 = pneg %p4104_p10  ;;  %p4111_p12 = por %p4110_p2, %p4109_p3 }
 0x102   : > { %p4112_p5 = pnand %p4111_p12, %p4105_p13 }
 0x104   : > { %4115 = shalt.err (!%p4112_p5)
}
 0x105   : > { %p5827_p9 = scmp.ne.s32.totalorder %s5818_s18, 0  ;;  %s4511_s1 = smov [#allocation8]  }
 0x106   : > { %s733_s2 = sshll.u32 %s4511_s1, 4  ;;  %s4512_s12 = smov [#allocation11]   ;;  %s734_s2 = int_to_ptr.vmem [resolvable:$true] %s733_s2 }
 0x107   : > { %3717 = dma.hbm_to_vmem [thread:$0]  (!%p5827_p9), %s4969_s5, 16, %s961_s9, %s5745_s0  }
 0x108   : > { %s757_s29 = sshll.u32 %s4512_s12, 4  ;;  %s5828_s11 = sld [smem:[#allocation58_spill]]  ;;  %s758_s29 = int_to_ptr.vmem [resolvable:$true] %s757_s29 }
 0x109   : > { %p5829_p8 = scmp.ne.s32.totalorder %s5811_s25, 0 }
 0x10e   : > { %s4116_s21 = scalar_lea.hbm %s5828_s11, 16 }
 0x10f   : > { %p4117_p12 = scmp.ne.s32.totalorder %s5828_s11, %s4116_s21  ;;  %p4123_p11 = scmp.lt.u32.totalorder %s4116_s21, %s5828_s11 }
 0x111   : > { %p4119_p7 = pnand %p4117_p12, %p5829_p8 }
 0x113   : > { %p4120_p1 = pneg %p4119_p7 }
 0x115   : > { %p4125_p6 = pnand %p4123_p11, %p4120_p1 }
 0x117   : > { %4128 = shalt.err (!%p4125_p6)
}
 0x118   : > { %s4129_s5 = scalar_lea.vmem %s734_s2, 16  ;;  %s4136_s9 = scalar_lea.vmem %s734_s2, 32 }
 0x119   : > { %p4130_p4 = scmp.ne.s32.totalorder %s734_s2, %s4129_s5  ;;  %p4137_p3 = scmp.lt.s32.totalorder %s734_s2, %s734_s2 }
 0x11a   : > { %p4138_p2 = scmp.lt.s32.totalorder %s4136_s9, %s4129_s5 }
 0x11b   : > { %p4132_p10 = pnand %p4130_p4, %p5829_p8 }
 0x11c   : > { %p4139_p5 = por %p4138_p2, %p4137_p3 }
 0x11d   : > { %p4133_p13 = pneg %p4132_p10 }
 0x11f   : > { %p4140_p9 = pnand %p4139_p5, %p4133_p13 }
 0x121   : > { %4143 = shalt.err (!%p4140_p9)
}
 0x122   : > { %p5830_p12 = scmp.ne.s32.totalorder %s5809_s24, 0  ;;  %s5831_s14 = sld [smem:[#allocation60_spill]] }
 0x124   : > { %3680 = dma.hbm_to_vmem [thread:$0]  (!%p5830_p12), %s5828_s11, 16, %s734_s2, [#allocation7]  }
 0x128   : > { %s4144_s19 = scalar_lea.hbm %s5831_s14, 16 }
 0x129   : > { %p4145_p7 = scmp.ne.s32.totalorder %s5831_s14, %s4144_s19  ;;  %p4151_p9 = scmp.lt.u32.totalorder %s4144_s19, %s5831_s14 }
 0x12b   : > { %p4147_p1 = pnand %p4145_p7, %p5829_p8 }
 0x12d   : > { %p4148_p11 = pneg %p4147_p1 }
 0x12f   : > { %p4153_p6 = pnand %p4151_p9, %p4148_p11 }
 0x131   : > { %4156 = shalt.err (!%p4153_p6)
}
 0x132   : > { %s4157_s9 = scalar_lea.vmem %s758_s29, 16  ;;  %s4164_s2 = scalar_lea.vmem %s758_s29, 32 }
 0x133   : > { %p4158_p4 = scmp.ne.s32.totalorder %s758_s29, %s4157_s9  ;;  %p4165_p3 = scmp.lt.s32.totalorder %s758_s29, %s758_s29 }
 0x134   : > { %p4166_p2 = scmp.lt.s32.totalorder %s4164_s2, %s4157_s9 }
 0x135   : > { %p4160_p10 = pnand %p4158_p4, %p5829_p8 }
 0x136   : > { %p4167_p5 = por %p4166_p2, %p4165_p3 }
 0x137   : > { %p4161_p13 = pneg %p4160_p10 }
 0x139   : > { %p4168_p0 = pnand %p4167_p5, %p4161_p13 }
 0x13b   : > { %4171 = shalt.err (!%p4168_p0)
}
 0x13c   : > { %3686 = dma.hbm_to_vmem [thread:$0]  (!%p5830_p12), %s5831_s14, 16, %s758_s29, [#allocation10]  }
 0x13d   : > { %s4513_s13 = smov [#allocation14]   ;;  %s5832_s10 = sld [smem:[#allocation62_spill]] }
 0x13e   : > { %s781_s15 = sshll.u32 %s4513_s13, 4  ;;  %s782_s15 = int_to_ptr.vmem [resolvable:$true] %s781_s15 }
 0x143   : > { %s4172_s23 = scalar_lea.hbm %s5832_s10, 16 }
 0x144   : > { %p4173_p7 = scmp.ne.s32.totalorder %s5832_s10, %s4172_s23  ;;  %p4179_p11 = scmp.lt.u32.totalorder %s4172_s23, %s5832_s10 }
 0x146   : > { %p4175_p0 = pnand %p4173_p7, %p5829_p8 }
 0x148   : > { %p4176_p1 = pneg %p4175_p0 }
 0x14a   : > { %p4181_p9 = pnand %p4179_p11, %p4176_p1 }
 0x14c   : > { %4184 = shalt.err (!%p4181_p9)
}
 0x14d   : > { %s4185_s29 = scalar_lea.vmem %s782_s15, 16  ;;  %s4192_s1 = scalar_lea.vmem %s782_s15, 32 }
 0x14e   : > { %p4186_p6 = scmp.ne.s32.totalorder %s782_s15, %s4185_s29  ;;  %p4193_p13 = scmp.lt.s32.totalorder %s782_s15, %s782_s15 }
 0x14f   : > { %p4194_p3 = scmp.lt.s32.totalorder %s4192_s1, %s4185_s29 }
 0x150   : > { %p4188_p4 = pnand %p4186_p6, %p5829_p8 }
 0x151   : > { %p4195_p2 = por %p4194_p3, %p4193_p13 }
 0x152   : > { %p4189_p10 = pneg %p4188_p4 }
 0x154   : > { %p4196_p5 = pnand %p4195_p2, %p4189_p10 }
 0x156   : > { %4199 = shalt.err (!%p4196_p5)
}
 0x157   : > { %3692 = dma.hbm_to_vmem [thread:$0]  (!%p5830_p12), %s5832_s10, 16, %s782_s15, [#allocation13]  }
 0x158   : > { %s3312_s24 = sadd.s32 4294967294, %s4500_s4   ;;  %s65_s25 = sadd.s32 1, %s4492_s8 }
 0x159   : > { %p66_p8 = scmp.ge.s32.totalorder %s65_s25, 4  ;;  %s68_s13 = sadd.s32 1, %s4496_s27 }
 0x15a   : > { %s75_s19 = sadd.s32 1, %s4480_s3  ;;  %p82_p7 = scmp.ne.s32.totalorder %s4480_s3, %s4476_s7 }
 0x15b   : > { %s5918_s25 = smov (%p66_p8, %s65_s25), 0  ;;  %s5920_s13 = smov (!%p66_p8, %s68_s13), %s4496_s27 }
 0x15c   : > { %5833 = sst [smem:[#allocation49_spill]] %s5918_s25  ;;  %p5834_p12 = scmp.eq.s32.totalorder %s4500_s4, 0 }
 0x15d   : > { %p88_p1 = scmp.ne.s32.totalorder %s4476_s7, %s4472_s30  ;;  %p70_p11 = scmp.ge.s32.totalorder %s5920_s13, 2 }
 0x15e   : > { %p5060_p0 = por %p5834_p12, %p82_p7  ;;  %s250_s21 = ssub.s32 %s4492_s8, %s5918_s25 }
 0x15f   : > { %p5836_p9 = scmp.eq.s32.totalorder %s4725_s28, 0  ;;  %p251_p4 = scmp.eq.s32.totalorder %s250_s21, 0 }
 0x160   : > { %s5922_s13 = smov (%p70_p11, %s5920_s13), 0  ;;  %s5839_s5 = sadd.s32 1, %s4468_s6 }
 0x161   : > { %p5073_p6 = por %p5836_p9, %p88_p1  ;;  %5838 = sst [smem:[#allocation50_spill]] %s5922_s13 }
 0x162   : > { %s5082_s9 = scalar_select %p251_p4, %s4468_s6, %s5839_s5  }
 0x163   : > { %s5837_s23 = scalar_select %p5073_p6, 1, 0 }
 0x164   : > { %5840 = sst [smem:[#allocation51_spill]] %s5082_s9  ;;  %s72_s2 = ssub.s32 %s4496_s27, %s5922_s13 }
 0x165   : > { %p696_p10 = scmp.eq.s32.totalorder %s4725_s28, 7  ;;  %p73_p13 = scmp.eq.s32.totalorder %s72_s2, 0 }
 0x166   : > { %p702_p3 = scmp.eq.s32.totalorder %s3312_s24, 7  ;;  %s798_s1 = sand.u32 1, %s4480_s3  }
 0x167   : > { %p5090_p2 = por %p696_p10, %p82_p7  ;;  %s3321_s21 = sshll.u32 %s798_s1, 3 }
 0x168   : > { %s5096_s0 = scalar_select %p73_p13, %s4480_s3, %s75_s19  }
 0x169   : > { %s5841_s29 = scalar_select %p5090_p2, 1, 0 }
 0x16a   : > { %5843 = sst [smem:[#allocation53_spill]] %s5096_s0  ;;  %p5101_p5 = por %p702_p3, %p88_p1 }
 0x16b   : > { %5842 = sst [smem:[#allocation52_spill]] %s5841_s29  ;;  %s3322_s5 = sshll.u32 %s4496_s27, 7 }
 0x16c   : > { %s5844_s12 = scalar_select %p5101_p5, 1, 0 }
 0x16d   : > { %s5846_s14 = sld [smem:[#allocation56_spill]]  ;;  %s802_s24 = scalar_lea.vmem [#allocation3], %s3321_s21 }
 0x16e   : > { %5845 = sst [smem:[#allocation54_spill]] %s5844_s12  ;;  %s809_s16 = sshll.u32 %s802_s24, 4  ;;  %s5119_s16 = int_to_ptr.vmem [resolvable:$true] %s809_s16 }
 0x16f   : > { %p5847_p8 = scmp.lt.s32.totalorder %s4500_s4, 8  ;;  %s5849_s10 = sld [smem:[#allocation66_spill]] }
 0x170   : > { %s799_s25 = scalar_lea.sflag [#allocation4], %s798_s1 }
 0x171   : > { %p5115_p7 = pnand %p5847_p8, %p5060_p0 }
 0x173   : > { %s5109_s2 = scalar_lea.hbm %s5846_s14, %s3322_s5  ;;  %p4202_p1 = pneg %p5115_p7 }
 0x174   : > { %s4200_s27 = scalar_lea.hbm %s5109_s2, 128  ;;  %s4205_s24 = scalar_lea.hbm %s5846_s14, 256 }
 0x175   : > { %s5125_s5 = scalar_lea.hbm %s5849_s10, %s4840_s22  ;;  %p4201_p12 = scmp.ne.s32.totalorder %s5109_s2, %s4200_s27 }
 0x176   : > { %p4206_p9 = scmp.lt.u32.totalorder %s5109_s2, %s5846_s14  ;;  %p4207_p4 = scmp.lt.u32.totalorder %s4205_s24, %s4200_s27 }
 0x177   : > { %p4203_p0 = pnand %p4202_p1, %p4201_p12  ;;  %p4209_p13 = scmp.lt.u32.totalorder %s4200_s27, %s5109_s2 }
 0x178   : > { %p4208_p10 = por %p4207_p4, %p4206_p9 }
 0x179   : > { %p4204_p11 = pneg %p4203_p0 }
 0x17a   : > { %p4210_p3 = por %p4209_p13, %p4208_p10 }
 0x17c   : > { %p4211_p8 = pnand %p4210_p3, %p4204_p11 }
 0x17e   : > { %4214 = shalt.err (!%p4211_p8)
}
 0x17f   : > { %s4215_s13 = scalar_lea.vmem %s5119_s16, 128  ;;  %s4514_s1 = smov [#allocation3]  }
 0x180   : > { %p4216_p12 = scmp.ne.s32.totalorder %s5119_s16, %s4215_s13  ;;  %s4220_s11 = sshll.u32 %s4514_s1, 4  ;;  %s4221_s11 = int_to_ptr.vmem [resolvable:$false] %s4220_s11 }
 0x181   : > { %s4222_s8 = scalar_lea.vmem %s4221_s11, 256  ;;  %p4223_p2 = scmp.lt.s32.totalorder %s5119_s16, %s4221_s11 }
 0x182   : > { %p4218_p0 = pnand %p4216_p12, %p4202_p1  ;;  %p4224_p9 = scmp.lt.s32.totalorder %s4222_s8, %s4215_s13 }
 0x184   : > { %p4219_p5 = pneg %p4218_p0  ;;  %p4225_p4 = por %p4224_p9, %p4223_p2 }
 0x186   : > { %p4226_p10 = pnand %p4225_p4, %p4219_p5 }
 0x188   : > { %4229 = shalt.err (!%p4226_p10)
}
 0x189   : > { %3696 = dma.hbm_to_vmem [thread:$0]  (!%p5115_p7), %s5109_s2, 128, %s5119_s16, %s799_s25  }
 0x18a   : > { %s852_s27 = scalar_lea.vmem [#allocation17], %s4837_s26  ;;  %s5850_s24 = sld [smem:[#allocation68_spill]] }
 0x18b   : > { %s859_s0 = sshll.u32 %s852_s27, 4  ;;  %s4230_s1 = scalar_lea.hbm %s5125_s5, 16  ;;  %s860_s0 = int_to_ptr.vmem [resolvable:$true] %s859_s0 }
 0x18c   : > { %p4231_p2 = scmp.ne.s32.totalorder %s5125_s5, %s4230_s1  ;;  %p5851_p5 = scmp.ne.s32.totalorder %s5819_s20, 0 }
 0x18d   : > { %s4235_s8 = scalar_lea.hbm %s5849_s10, 64  ;;  %p4236_p7 = scmp.lt.u32.totalorder %s5125_s5, %s5849_s10 }
 0x18e   : > { %p4233_p1 = pnand %p4231_p2, %p5851_p5  ;;  %p4237_p13 = scmp.lt.u32.totalorder %s4235_s8, %s4230_s1 }
 0x18f   : > { %p4239_p8 = scmp.lt.u32.totalorder %s4230_s1, %s5125_s5 }
 0x190   : > { %s5157_s13 = scalar_lea.hbm %s5850_s24, %s4840_s22  ;;  %p4234_p11 = pneg %p4233_p1 }
 0x191   : > { %p4238_p3 = por %p4237_p13, %p4236_p7 }
 0x193   : > { %p4240_p12 = por %p4239_p8, %p4238_p3 }
 0x195   : > { %p4241_p0 = pnand %p4240_p12, %p4234_p11 }
 0x197   : > { %4244 = shalt.err (!%p4241_p0)
}
 0x198   : > { %s4245_s16 = scalar_lea.vmem %s860_s0, 16  ;;  %s4515_s25 = smov [#allocation17]  }
 0x199   : > { %p4246_p9 = scmp.ne.s32.totalorder %s860_s0, %s4245_s16  ;;  %s4250_s2 = sshll.u32 %s4515_s25, 4  ;;  %s4251_s2 = int_to_ptr.vmem [resolvable:$false] %s4250_s2 }
 0x19a   : > { %s4252_s27 = scalar_lea.vmem %s4251_s2, 32  ;;  %p4253_p2 = scmp.lt.s32.totalorder %s860_s0, %s4251_s2 }
 0x19b   : > { %p4248_p4 = pnand %p4246_p9, %p5851_p5  ;;  %p4254_p1 = scmp.lt.s32.totalorder %s4252_s27, %s4245_s16 }
 0x19d   : > { %p4249_p10 = pneg %p4248_p4  ;;  %p4255_p6 = por %p4254_p1, %p4253_p2 }
 0x19f   : > { %p4256_p7 = pnand %p4255_p6, %p4249_p10 }
 0x1a1   : > { %4259 = shalt.err (!%p4256_p7)
}
 0x1a2   : > { %p5852_p13 = scmp.ne.s32.totalorder %s5818_s18, 0  ;;  %s5853_s3 = scalar_lea.sflag [#allocation16], %s4828_s17 }
 0x1a3   : > { %s890_s14 = scalar_lea.vmem [#allocation20], %s4837_s26  ;;  %s5854_s19 = sld [smem:[#allocation70_spill]] }
 0x1a4   : > { %3702 = dma.hbm_to_vmem [thread:$0]  (!%p5852_p13), %s5125_s5, 16, %s860_s0, %s5853_s3  }
 0x1a5   : > { %s897_s15 = sshll.u32 %s890_s14, 4  ;;  %s4260_s8 = scalar_lea.hbm %s5157_s13, 16  ;;  %s898_s15 = int_to_ptr.vmem [resolvable:$true] %s897_s15 }
 0x1a6   : > { %p4261_p6 = scmp.ne.s32.totalorder %s5157_s13, %s4260_s8  ;;  %s4265_s2 = scalar_lea.hbm %s5850_s24, 64 }
 0x1a7   : > { %p4266_p8 = scmp.lt.u32.totalorder %s5157_s13, %s5850_s24  ;;  %p4267_p12 = scmp.lt.u32.totalorder %s4265_s2, %s4260_s8 }
 0x1a8   : > { %p4263_p11 = pnand %p4261_p6, %p5851_p5  ;;  %p4269_p9 = scmp.lt.u32.totalorder %s4260_s8, %s5157_s13 }
 0x1a9   : > { %s5183_s11 = scalar_lea.hbm %s5854_s19, %s4840_s22  ;;  %p4268_p0 = por %p4267_p12, %p4266_p8 }
 0x1aa   : > { %p4264_p3 = pneg %p4263_p11 }
 0x1ab   : > { %p4270_p4 = por %p4269_p9, %p4268_p0 }
 0x1ad   : > { %p4271_p10 = pnand %p4270_p4, %p4264_p3 }
 0x1af   : > { %4274 = shalt.err (!%p4271_p10)
}
 0x1b0   : > { %s4275_s5 = scalar_lea.vmem %s898_s15, 16  ;;  %s4516_s0 = smov [#allocation20]  }
 0x1b1   : > { %p4276_p2 = scmp.ne.s32.totalorder %s898_s15, %s4275_s5  ;;  %s4280_s3 = sshll.u32 %s4516_s0, 4  ;;  %s4281_s3 = int_to_ptr.vmem [resolvable:$false] %s4280_s3 }
 0x1b2   : > { %s4282_s14 = scalar_lea.vmem %s4281_s3, 32  ;;  %p4283_p6 = scmp.lt.s32.totalorder %s898_s15, %s4281_s3 }
 0x1b3   : > { %p4278_p1 = pnand %p4276_p2, %p5851_p5  ;;  %p4284_p11 = scmp.lt.s32.totalorder %s4282_s14, %s4275_s5 }
 0x1b5   : > { %p4279_p7 = pneg %p4278_p1  ;;  %p4285_p13 = por %p4284_p11, %p4283_p6 }
 0x1b7   : > { %p4286_p8 = pnand %p4285_p13, %p4279_p7 }
 0x1b9   : > { %4289 = shalt.err (!%p4286_p8)
}
 0x1ba   : > { %p5855_p12 = scmp.ne.s32.totalorder %s5818_s18, 0  ;;  %s5856_s10 = scalar_lea.sflag [#allocation19], %s4828_s17 }
 0x1bb   : > { %s928_s21 = scalar_lea.vmem [#allocation23], %s4837_s26  ;;  %s5857_s25 = sld [smem:[#allocation75_spill]] }
 0x1bc   : > { %3708 = dma.hbm_to_vmem [thread:$0]  (!%p5855_p12), %s5157_s13, 16, %s898_s15, %s5856_s10  }
 0x1bd   : > { %s935_s1 = sshll.u32 %s928_s21, 4  ;;  %s4290_s27 = scalar_lea.hbm %s5183_s11, 16  ;;  %s936_s1 = int_to_ptr.vmem [resolvable:$true] %s935_s1 }
 0x1be   : > { %p4291_p13 = scmp.ne.s32.totalorder %s5183_s11, %s4290_s27  ;;  %s4295_s3 = scalar_lea.hbm %s5854_s19, 64 }
 0x1bf   : > { %p4296_p9 = scmp.lt.u32.totalorder %s5183_s11, %s5854_s19  ;;  %p4297_p4 = scmp.lt.u32.totalorder %s4295_s3, %s4290_s27 }
 0x1c0   : > { %p4293_p3 = pnand %p4291_p13, %p5851_p5  ;;  %p4299_p2 = scmp.lt.u32.totalorder %s4290_s27, %s5183_s11 }
 0x1c1   : > { %s5209_s2 = scalar_lea.hbm %s5857_s25, %s4840_s22  ;;  %p4298_p10 = por %p4297_p4, %p4296_p9 }
 0x1c2   : > { %p4294_p0 = pneg %p4293_p3 }
 0x1c3   : > { %p4300_p1 = por %p4299_p2, %p4298_p10 }
 0x1c5   : > { %p4301_p7 = pnand %p4300_p1, %p4294_p0 }
 0x1c7   : > { %4304 = shalt.err (!%p4301_p7)
}
 0x1c8   : > { %s4305_s22 = scalar_lea.vmem %s936_s1, 16  ;;  %s4517_s13 = smov [#allocation23]  }
 0x1c9   : > { %p4306_p6 = scmp.ne.s32.totalorder %s936_s1, %s4305_s22  ;;  %s4310_s15 = sshll.u32 %s4517_s13, 4  ;;  %s4311_s15 = int_to_ptr.vmem [resolvable:$false] %s4310_s15 }
 0x1ca   : > { %s4312_s10 = scalar_lea.vmem %s4311_s15, 32  ;;  %p4313_p13 = scmp.lt.s32.totalorder %s936_s1, %s4311_s15 }
 0x1cb   : > { %p4308_p11 = pnand %p4306_p6, %p5851_p5  ;;  %p4314_p3 = scmp.lt.s32.totalorder %s4312_s10, %s4305_s22 }
 0x1cd   : > { %p4309_p8 = pneg %p4308_p11  ;;  %p4315_p12 = por %p4314_p3, %p4313_p13 }
 0x1cf   : > { %p4316_p4 = pnand %p4315_p12, %p4309_p8 }
 0x1d1   : > { %4319 = shalt.err (!%p4316_p4)
}
 0x1d2   : > { %p5858_p9 = scmp.ne.s32.totalorder %s5818_s18, 0  ;;  %s5859_s24 = scalar_lea.sflag [#allocation22], %s4828_s17 }
 0x1d3   : > { %s984_s21 = scalar_lea.vmem [#allocation26], %s4837_s26  ;;  %s4320_s16 = scalar_lea.hbm %s5209_s2, 16 }
 0x1d4   : > { %3714 = dma.hbm_to_vmem [thread:$0]  (!%p5858_p9), %s5183_s11, 16, %s936_s1, %s5859_s24  }
 0x1d5   : > { %s991_s8 = sshll.u32 %s984_s21, 4  ;;  %p4321_p0 = scmp.ne.s32.totalorder %s5209_s2, %s4320_s16  ;;  %s992_s8 = int_to_ptr.vmem [resolvable:$true] %s991_s8 }
 0x1d6   : > { %s4325_s0 = scalar_lea.hbm %s5857_s25, 64  ;;  %p4326_p2 = scmp.lt.u32.totalorder %s5209_s2, %s5857_s25 }
 0x1d7   : > { %p4323_p12 = pnand %p4321_p0, %p5851_p5  ;;  %p4327_p1 = scmp.lt.u32.totalorder %s4325_s0, %s4320_s16 }
 0x1d8   : > { %p4329_p6 = scmp.lt.u32.totalorder %s4320_s16, %s5209_s2 }
 0x1d9   : > { %p4324_p10 = pneg %p4323_p12  ;;  %p4328_p7 = por %p4327_p1, %p4326_p2 }
 0x1db   : > { %p4330_p11 = por %p4329_p6, %p4328_p7 }
 0x1dd   : > { %p4331_p8 = pnand %p4330_p11, %p4324_p10 }
 0x1df   : > { %4334 = shalt.err (!%p4331_p8)
}
 0x1e0   : > { %s4335_s26 = scalar_lea.vmem %s992_s8, 16  ;;  %s4518_s11 = smov [#allocation26]  }
 0x1e1   : > { %p4336_p13 = scmp.ne.s32.totalorder %s992_s8, %s4335_s26  ;;  %s4340_s1 = sshll.u32 %s4518_s11, 4  ;;  %s4341_s1 = int_to_ptr.vmem [resolvable:$false] %s4340_s1 }
 0x1e2   : > { %s4342_s22 = scalar_lea.vmem %s4341_s1, 32  ;;  %p4343_p0 = scmp.lt.s32.totalorder %s992_s8, %s4341_s1 }
 0x1e3   : > { %p4338_p3 = pnand %p4336_p13, %p5851_p5  ;;  %p4344_p12 = scmp.lt.s32.totalorder %s4342_s22, %s4335_s26 }
 0x1e5   : > { %p4339_p4 = pneg %p4338_p3  ;;  %p4345_p9 = por %p4344_p12, %p4343_p0 }
 0x1e7   : > { %p4346_p1 = pnand %p4345_p9, %p4339_p4 }
 0x1e9   : > { %4349 = shalt.err (!%p4346_p1)
}
 0x1ea   : > { %p5860_p2 = scmp.ne.s32.totalorder %s5818_s18, 0  ;;  %s5861_s13 = scalar_lea.sflag [#allocation25], %s4828_s17 }
 0x1eb   : > { %s5862_s15 = sld [smem:[#allocation47_spill]] }
 0x1ec   : > { %3720 = dma.hbm_to_vmem [thread:$0]  (!%p5860_p2), %s5209_s2, 16, %s992_s8, %s5861_s13  }
 0x1f1   : > { %p5863_p10 = scmp.ne.s32.totalorder %s5862_s15, 0 }
 0x1f3   : > { %1018 = sbr.rel (%p5863_p10) target bundleno = 4188 (0x105c), region = 120 }
 0x1fa   : > { %s5253_s20 = sand.u32 1, %s4476_s7   ;;  %p5864_p5 = scmp.ne.s32.totalorder %s5837_s23, 0 }
 0x1fb   : > { %s5759_s10 = sshll.u32 %s5253_s20, 3  ;;  %s1021_s24 = scalar_lea.sflag [#allocation4], %s5253_s20 }
 0x1fc   : > { %s5259_s21 = scalar_lea.vmem [#allocation3], %s5759_s10 }
 0x1fd   : > { %4423 = dma.done.wait (%p5864_p5), %s1021_s24, 128  }
 0x1fe   : > { %4425 = vsyncadd (%p5864_p5), %s1021_s24, 4294967168  ;;  %p5865_p9 = scmp.eq.s32.totalorder %s4725_s28, 0 }
 0x200   : > { %4427 = dma.done.wait (%p5865_p9), [#allocation7], 32   ;;  %p5866_p7 = pmov %p5865_p9 }
 0x202   : > { %4429 = vsyncadd (%p5866_p7), [#allocation7], 4294967264  ;;  %p5867_p6 = pmov %p5866_p7 }
 0x204   : > { %4431 = dma.done.wait (%p5867_p6), [#allocation10], 144   ;;  %p5868_p11 = pmov %p5867_p6 }
 0x205   : > { %p5869_p8 = pmov %p5867_p6 }
 0x206   : > { %4433 = vsyncadd (%p5868_p11), [#allocation10], 4294967152 }
 0x207   : > { %4435 = dma.done.wait (%p5869_p8), [#allocation13], 272   ;;  %p5870_p13 = pmov %p5867_p6 }
 0x208   : > { %s5871_s17 = sld [smem:[#allocation37_spill]]  ;;  %s5872_s18 = sld [smem:[#allocation48_spill]] }
 0x209   : > { %4437 = vsyncadd (%p5870_p13), [#allocation13], 4294967024  ;;  %s1053_s23 = sand.u32 1, %s4725_s28  }
 0x20a   : > { %s1054_s8 = scalar_lea.sflag [#allocation16], %s1053_s23 }
 0x20e   : > { %s5279_s2 = sand.u32 1, %s5871_s17   ;;  %p5873_p3 = scmp.ne.s32.totalorder %s5872_s18, 0 }
 0x210   : > { %4439 = dma.done.wait (%p5873_p3), %s1054_s8, 32  }
 0x211   : > { %4441 = vsyncadd (%p5873_p3), %s1054_s8, 4294967264  ;;  %s3343_s27 = sshll.u32 %s5279_s2, 4  ;;  %s1070_s0 = scalar_lea.sflag [#allocation19], %s1053_s23 }
 0x212   : > { %s5288_s3 = scalar_lea.vmem [#allocation18], %s3343_s27 }
 0x213   : > { %4443 = dma.done.wait (%p5873_p3), %s1070_s0, 272  }
 0x214   : > { %4445 = vsyncadd (%p5873_p3), %s1070_s0, 4294967024  ;;  %s1087_s14 = scalar_lea.sflag [#allocation22], %s1053_s23  ;;  %s5295_s26 = scalar_lea.vmem [#allocation21], %s3343_s27 }
 0x215   : > { %4447 = dma.done.wait (%p5873_p3), %s1087_s14, 272  }
 0x216   : > { %4449 = vsyncadd (%p5873_p3), %s1087_s14, 4294967024  ;;  %s1104_s1 = scalar_lea.sflag [#allocation25], %s1053_s23 }
 0x217   : > { %4451 = dma.done.wait (%p5873_p3), %s1104_s1, 32  }
 0x218   : > { %4453 = vsyncadd (%p5873_p3), %s1104_s1, 4294967264  ;;  %s5874_s13 = sld [smem:[#allocation42_spill]]  ;;  %s5875_s27 = sld [smem:[#allocation63_spill]] }
 0x219   : > { %s5876_s1 = sld [smem:[#allocation65_spill]]  ;;  %s5877_s5 = sld [smem:[#allocation71_spill]] }
 0x21a   : > { %s5879_s25 = sld [smem:[#allocation73_spill]]  ;;  %s5880_s23 = sld [smem:[#allocation74_spill]] }
 0x21b   : > { %s5881_s30 = sld [smem:[#allocation76_spill]]  ;;  %s5882_s4 = sld [smem:[#allocation77_spill]] }
 0x21c   : > { %s5883_s11 = sld [smem:[#allocation78_spill]]  ;;  %s5884_s19 = sshll.u32 %s5253_s20, 3 }
 0x21e   : > { %p1247_p4 = scmp.lt.s32.totalorder %s5874_s13, 3  ;;  %p3354_p0 = scmp.ne.s32.totalorder %s5874_s13, 0 }
 0x21f   : > { %v1284_v0 = vld [vmem:[%s5259_s21] sm:$0xff] (!%p3354_p0)  ;;  %vm1287_vm0 = vcmask (!%p3354_p0), 130048   ;;  %v3854_v7 = vld [vmem:[#allocation9] sm:$0xff] (!%p3354_p0)   ;;  %v4519_v8 = vmov (!%p3354_p0), 0.0   ;;  %vm4520_vm1 = vmmov (!%p3354_p0), 0   ;;  %v4521_v47 = vmov (!%p3354_p0), -1.0  }
 0x220   : > { %s5309_s15 = scalar_select %p1247_p4, %s5874_s13, 3 }
 0x221   : > { %v1288_v1 = vsel (!%p3354_p0), %vm1287_vm0, %v1284_v0, 0.0  ;;  %3474 = vmatprep.subr.bf16.mxu0 (!%p3354_p0), %v4519_v8  ;;  %3476 = vmatprep.mubr.msk.bf16.mxu0 (!%p3354_p0), %vm4520_vm1, %v4519_v8  ;;  %v3355_v13 = vld [vmem:[#allocation6] ss:$0 sm:$0xff] (!%p3354_p0)  ;;  %v3356_v15 = vld [vmem:[#allocation8] ss:$0 sm:$0xff] (!%p3354_p0)  ;;  %v3855_v19 = vld [vmem:[#allocation12] sm:$0xff] (!%p3354_p0)  }
 0x222   : > { %s3416_s24 = sshll.u32 %s5309_s15, 4  ;;  %s3419_s17 = sshll.u32 %s5309_s15, 3  ;;  %1289 = vadd.xlane.f32.xlu0 (!%p3354_p0), %v1288_v1  ;;  %3475 = vmatpush3.bf16.msra.mxu0 (!%p3354_p0), %v3854_v7  ;;  %v3856_v20 = vld [vmem:[#allocation12 + $0x8] sm:$0xff] (!%p3354_p0)   ;;  %v3357_v21 = vld [vmem:[#allocation11] ss:$0 sm:$0xff] (!%p3354_p0)  ;;  %vm1426_vm3 = vcmask (!%p3354_p0), 261120  }
 0x223   : > { %s5316_s18 = scalar_lea.vmem %s5875_s27, %s3416_s24  ;;  %s5321_s22 = scalar_lea.vmem %s5876_s1, %s3416_s24  ;;  %3480 = vmatprep.subr.bf16.mxu1 (!%p3354_p0), %v4519_v8  ;;  %3484 = vmatprep.mubr.msk.bf16.mxu1 (!%p3354_p0), %vm4520_vm1, %v4519_v8  ;;  %v3360_v54 = vld [vmem:[#allocation14] ss:$0 sm:$0xff] (!%p3354_p0) }
 0x224   : > { %s5326_s16 = scalar_lea.vmem %s5877_s5, %s3416_s24  ;;  %s5331_s7 = scalar_lea.vmem %s5879_s25, %s3419_s17  ;;  %3481 = vmatpush3.bf16.msra.mxu1 (!%p3354_p0), %v3855_v19 }
 0x225   : > { %5878 = sst [smem:[#allocation55_spill]] %s5326_s16  ;;  %s1269_s8 = scalar_lea.vmem %s5880_s23, %s5309_s15  ;;  %3482 = vmatprep.subr.bf16.mxu1 (!%p3354_p0), %v4519_v8 }
 0x226   : > { %s1272_s0 = scalar_lea.vmem %s5881_s30, %s5309_s15  ;;  %s1275_s29 = scalar_lea.vmem %s5882_s4, %s5309_s15 }
 0x227   : > { %s1278_s24 = scalar_lea.vmem %s5883_s11, %s5309_s15  ;;  %s1114_s16 = scalar_lea.vmem [#allocation26], %s5279_s2 }
 0x228   : > { %s5352_s25 = scalar_lea.vmem [#allocation27], %s5884_s19  ;;  %1283 = sbr.rel (%p3354_p0) target bundleno = 1338 (0x53a), region = 184  ;;  %3483 = vmatpush3.bf16.msra.mxu1 (!%p3354_p0), %v3856_v20 }
 0x2af   : > { %v1290_v2 = vpop.xlane.xlu0 %1289 }
 0x2b0   : > { %v1292_v3 = vmul.f32 0.0625, %v1290_v2 }
 0x2b2   : > { %v1293_v4 = vsub.f32 %v1284_v0, %v1292_v3 }
 0x2b4   : > { %v1294_v5 = vmul.f32 %v1293_v4, %v1293_v4 }
 0x2b6   : > { %v1295_v6 = vsel %vm1287_vm0, %v1294_v5, 0.0 }
 0x2b7   : > { %1296 = vadd.xlane.f32.xlu0 %v1295_v6 }
 0x344   : > { %v1297_v9 = vpop.xlane.xlu0 %1296 }
 0x345   : > { %v1298_v10 = vmul.f32 0.0625, %v1297_v9 }
 0x347   : > { %v1299_v11 = vadd.f32 1e-05, %v1298_v10 }
 0x349   : > { %3857 = vrsqrt.f32 %v1299_v11 }
 0x353   : > { %v3858_v12 = vpop.eup %3857 }
 0x354   : > { %v1301_v14 = vmul.f32 %v3858_v12, %v1293_v4 }
 0x356   : > { %v1308_v16 = vmul.f32 %v3355_v13, %v1301_v14 }
 0x358   : > { %v1315_v17 = vadd.f32 %v3356_v15, %v1308_v16 }
 0x35a   : > { %v1318_v18 = vpack.c.bf16 %v1315_v17, %v1315_v17 }
 0x35c   : > { %3477 = vmatmul.mubr.msk.bf16.vlgmr.msra.gmra.mrb[0].mxu0 %vm1287_vm0, %v1318_v18 }
 0x42f   : > { %v1369_v22 = vpop.f32.mrb[0].mxu0 }
 0x430   : > { %v1370_v23 = vadd.f32 %v3357_v21, %v1369_v22  ;;  %v3478_v24 = vpop.f32.mrb[1].mxu0 }
 0x431   : > { %v1372_v25 = vpop.f32.mrb[2].mxu0 }
 0x432   : > { %v1376_v26 = vmul.f32 0.70710677, %v1370_v23  ;;  %v3479_v27 = vpop.f32.mrb[3].mxu0  ;;  %v1375_v50 = vmul.f32 0.5, %v1370_v23 }
 0x434   : > { %v1379_v28 = vand.u32 2147483647, %v1376_v26  ;;  %vm1377_vm2 = vcmp.ge.f32.partialorder %v1376_v26, 0.0 }
 0x435   : > { %v1378_v48 = vsel %vm1377_vm2, 1.0, %v4521_v47 }
 0x436   : > { %v1380_v29 = vmul.f32 0.3275911, %v1379_v28  ;;  %v1393_v31 = vsub.f32 0.0, %v1379_v28 }
 0x438   : > { %v1381_v30 = vadd.f32 1.0, %v1380_v29  ;;  %v1394_v33 = vmul.f32 %v1393_v31, %v1379_v28 }
 0x43a   : > { %3859 = vrcp.f32 %v1381_v30  ;;  %v1395_v36 = vmul.f32 1.442695, %v1394_v33 }
 0x43c   : > { %3861 = vpow2.f32 %v1395_v36 }
 0x444   : > { %v3860_v32 = vpop.eup %3859 }
 0x445   : > { %v1384_v34 = vmul.f32 1.0614054, %v3860_v32 }
 0x446   : > { %v3862_v44 = vpop.eup %3861 }
 0x447   : > { %v1385_v35 = vadd.f32 -1.4531521, %v1384_v34 }
 0x449   : > { %v1386_v37 = vmul.f32 %v3860_v32, %v1385_v35 }
 0x44b   : > { %v1387_v38 = vadd.f32 1.4214138, %v1386_v37 }
 0x44d   : > { %v1388_v39 = vmul.f32 %v3860_v32, %v1387_v38 }
 0x44f   : > { %v1389_v40 = vadd.f32 -0.28449672, %v1388_v39 }
 0x451   : > { %v1390_v41 = vmul.f32 %v3860_v32, %v1389_v40 }
 0x453   : > { %v1391_v42 = vadd.f32 0.2548296, %v1390_v41 }
 0x455   : > { %v1392_v43 = vmul.f32 %v3860_v32, %v1391_v42 }
 0x457   : > { %v1397_v45 = vmul.f32 %v3862_v44, %v1392_v43 }
 0x459   : > { %v1398_v46 = vsub.f32 1.0, %v1397_v45 }
 0x45b   : > { %v1399_v49 = vmul.f32 %v1398_v46, %v1378_v48 }
 0x45d   : > { %v1400_v51 = vadd.f32 1.0, %v1399_v49 }
 0x45f   : > { %v1401_v52 = vmul.f32 %v1400_v51, %v1375_v50 }
 0x461   : > { %v1406_v53 = vpack.c.bf16 %v1401_v52, %v1401_v52 }
 0x463   : > { %3485 = vmatmul.mubr.msk.bf16.vlgmr.msra.gmra.mrb[0].mxu1 %vm1426_vm3, %v1406_v53 }
 0x536   : > { %v1464_v55 = vpop.f32.mrb[0].mxu1 }
 0x537   : > { %v1465_v56 = vadd.f32 %v3360_v54, %v1464_v55  ;;  %v3486_v57 = vpop.f32.mrb[1].mxu1 }
 0x538   : > { %v1467_v58 = vpop.f32.mrb[2].mxu1 }
 0x539   : > { %1470 = vst.msk [vmem:[#allocation2] sm:$0xff] %vm1426_vm3, %v1465_v56  ;;  %v3487_v59 = vpop.f32.mrb[3].mxu1 }
 0x53a PF: > { %v3863_v60 = vld [vmem:[%s5316_s18] sm:$0xff]   ;;  %v4522_v61 = vmov 0.0   ;;  %v3865_v63 = vld [vmem:[%s5316_s18 + $0x8] sm:$0xff]   ;;  %vm4523_vm4 = vmmov 0   ;;  %vm1496_vm5 = vcmask 261120   ;;  %s5885_s6 = scalar_lea.vmem [#allocation15], %s5279_s2 }
 0x53b   : > { %3488 = vmatprep.subr.bf16.mxu0 %v4522_v61  ;;  %3496 = vmatprep.subr.bf16.mxu1 %v4522_v61  ;;  %v3864_v62 = vld [vmem:[%s5321_s22] sm:$0xff]   ;;  %v3866_v0 = vld [vmem:[%s5321_s22 + $0x8] sm:$0xff]   ;;  %s5886_s30 = scalar_lea.vmem [#allocation17], %s5279_s2  ;;  %s4524_s4 = smov 124   ;;  %vm1756_vm6 = vcmask 31744   ;;  %vm2225_vm7 = vcmask 1043456  }
 0x53c   : > { %3489 = vmatpush3.bf16.msra.mxu0 %v3863_v60  ;;  %3492 = vmatprep.mubr.msk.bf16.mxu0 %vm4523_vm4, %v4522_v61  ;;  %v3867_v3 = vld [vmem:[%s5288_s3] sm:$0xff]   ;;  %v3868_v4 = vld [vmem:[%s5288_s3 + $0x8] sm:$0xff]   ;;  %s4525_s9 = smov 116   ;;  %s4526_s12 = smov 120   ;;  %vm2125_vm8 = vcmask 64512   ;;  %vm2621_vm9 = vcmask 97280  }
 0x53d   : > { %3497 = vmatpush3.bf16.msra.mxu1 %v3864_v62  ;;  %3490 = vmatprep.subr.bf16.mxu0 %v4522_v61  ;;  %v3364_v5 = vld [vmem:[%s5885_s6] ss:$0 sm:$0xff]  ;;  %s4527_s10 = smov 112   ;;  %s4528_s21 = smov 108   ;;  %vm2623_vm10 = vcmask 130048   ;;  %vm2625_vm11 = vcmask 162816  }
 0x53e   : > { %3498 = vmatprep.subr.bf16.mxu1 %v4522_v61  ;;  %3500 = vmatprep.mubr.msk.bf16.mxu1 %vm4523_vm4, %v4522_v61  ;;  %v3368_v6 = vld [vmem:[%s5886_s30] ss:$0 sm:$0xff]  ;;  %s4529_s3 = smov 104   ;;  %s4530_s22 = smov 100   ;;  %vm2627_vm12 = vcmask 195584   ;;  %vm2629_vm13 = vcmask 228352  }
 0x53f   : > { %s5887_s13 = scalar_lea.vmem [#allocation20], %s5279_s2  ;;  %s4531_s17 = smov 4  }
 0x540   : > { %v5371_v1 = vld [vmem:[#allocation2] sm:$0xff]  ;;  %3491 = vmatpush3.bf16.msra.mxu0 %v3865_v63  ;;  %s4532_s18 = smov 8   ;;  %s4533_s23 = smov 12  }
 0x541   : > { %v1476_v2 = vpack.c.bf16 %v5371_v1, %v5371_v1  ;;  %3499 = vmatpush3.bf16.msra.mxu1 %v3866_v0  ;;  %3504 = vmatprep.subr.bf16.mxu0 %v4522_v61  ;;  %v3372_v46 = vld [vmem:[%s5887_s13] ss:$0 sm:$0xff]  ;;  %s4534_s27 = smov 16   ;;  %s4535_s14 = smov 20  }
 0x542   : > { %3512 = vmatprep.subr.bf16.mxu1 %v4522_v61  ;;  %s4536_s1 = smov 24   ;;  %s5888_s28 = scalar_lea.vmem [#allocation23], %s5279_s2 }
 0x543   : > { %3493 = vmatmul.mubr.msk.bf16.vlgmr.msra.gmra.mrb[0].mxu0 %vm1496_vm5, %v1476_v2  ;;  %s5889_s5 = sld [smem:[#allocation55_spill]]  ;;  %s5891_s30 = scalar_lea.vmem [#allocation24], %s5279_s2 }
 0x544   : > { %3501 = vmatmul.mubr.msk.bf16.vlgmr.msra.gmra.mrb[0].mxu1 %vm1496_vm5, %v1476_v2  ;;  %3508 = vmatprep.mubr.msk.bf16.mxu0 %vm4523_vm4, %v4522_v61 }
 0x545   : > { %3514 = vmatprep.mubr.msk.bf16.mxu1 %vm4523_vm4, %v4522_v61  ;;  %3505 = vmatpush3.bf16.msra.mxu0 %v3867_v3 }
 0x546   : > { %3506 = vmatprep.subr.bf16.mxu0 %v4522_v61 }
 0x549   : > { %3507 = vmatpush3.bf16.msra.mxu0 %v3868_v4 }
 0x54a   : > { %3518 = vmatprep.subr.bf16.mxu0 %v4522_v61 }
 0x54c   : > { %3509 = vmatmul.mubr.msk.bf16.vlgmr.msra.gmra.mrb[4].mxu0 %vm1496_vm5, %v1476_v2 }
 0x54d   : > { %3520 = vmatprep.mubr.msk.bf16.mxu0 %vm4523_vm4, %v4522_v61 }
 0x616   : > { %v1534_v7 = vpop.f32.mrb[0].mxu0 }
 0x617   : > { %v1535_v8 = vadd.f32 %v3364_v5, %v1534_v7  ;;  %v1597_v9 = vpop.f32.mrb[0].mxu1  ;;  %v3494_v10 = vpop.f32.mrb[1].mxu0 }
 0x618   : > { %v1598_v11 = vadd.f32 %v3368_v6, %v1597_v9  ;;  %v3502_v12 = vpop.f32.mrb[1].mxu1  ;;  %v1537_v13 = vpop.f32.mrb[2].mxu0 }
 0x619   : > { %v1600_v14 = vpop.f32.mrb[2].mxu1  ;;  %1667 = vrot.lane.b32.xlu1 %v1535_v8, %s4524_s4  ;;  %v3495_v15 = vpop.f32.mrb[3].mxu0  ;;  %v1688_v19 = vpack.c.bf16 %v1535_v8, %v1535_v8 }
 0x61a   : > { %1697 = vrot.lane.b32.xlu0 %v1598_v11, %s4524_s4  ;;  %v3503_v16 = vpop.f32.mrb[3].mxu1  ;;  %v1718_v17 = vpack.c.bf16 %v1598_v11, %v1598_v11 }
 0x61c   : > { %v1761_v18 = vsel %vm1756_vm6, %v1718_v17, 0 }
 0x61d   : > { %3513 = vmatpush3.bf16.xpose.msra.mxu1 %v1761_v18  ;;  %1703 = vrot.lane.b32.xlu1 %v1598_v11, %s4525_s9 }
 0x61e   : > { %1700 = vrot.lane.b32.xlu0 %v1598_v11, %s4526_s12  ;;  %3524 = vmatprep.subr.bf16.mxu1 %v4522_v61 }
 0x61f   : > { %v1660_v23 = vpop.f32.mrb[4].mxu0 }
 0x620   : > { %v3510_v26 = vpop.f32.mrb[5].mxu0  ;;  %v5434_v52 = vadd.f32 %v3372_v46, %v1660_v23 }
 0x621   : > { %1706 = vrot.lane.b32.xlu1 %v1598_v11, %s4527_s10  ;;  %v1663_v28 = vpop.f32.mrb[6].mxu0 }
 0x622   : > { %1670 = vrot.lane.b32.xlu0 %v1535_v8, %s4526_s12  ;;  %v3511_v30 = vpop.f32.mrb[7].mxu0  ;;  %v1748_v56 = vpack.c.bf16 %v5434_v52, %v5434_v52 }
 0x624   : > { %3515 = vmatmul.mubr.msk.bf16.vlgmr.msra.gmra.mrb[4].mxu1 %vm1756_vm6, %v1688_v19  ;;  %v2227_v60 = vsel %vm2225_vm7, %v1748_v56, 0 }
 0x625   : > { %1709 = vrot.lane.b32.xlu1 %v1598_v11, %s4528_s21  ;;  %3526 = vmatprep.mubr.msk.bf16.mxu1 %vm4523_vm4, %v4522_v61 }
 0x626   : > { %1673 = vrot.lane.b32.xlu0 %v1535_v8, %s4525_s9 }
 0x629   : > { %1712 = vrot.lane.b32.xlu1 %v1598_v11, %s4529_s3 }
 0x62a   : > { %1676 = vrot.lane.b32.xlu0 %v1535_v8, %s4527_s10 }
 0x62d   : > { %1715 = vrot.lane.b32.xlu1 %v1598_v11, %s4530_s22 }
 0x62e   : > { %1679 = vrot.lane.b32.xlu0 %v1535_v8, %s4528_s21 }
 0x631   : > { %1685 = vrot.lane.b32.xlu1 %v1535_v8, %s4530_s22 }
 0x632   : > { %1682 = vrot.lane.b32.xlu0 %v1535_v8, %s4529_s3 }
 0x68b   : > { %v1668_v20 = vpop.permute.xlu1 %1667 }
 0x68c   : > { %v1698_v21 = vpop.permute.xlu0 %1697  ;;  %v1689_v35 = vpack.c.bf16 %v1668_v20, %v1668_v20 }
 0x68d   : > { %v1719_v22 = vpack.c.bf16 %v1698_v21, %v1698_v21 }
 0x68f   : > { %v1807_v24 = vsel %vm1756_vm6, %v1719_v22, 0  ;;  %v1704_v25 = vpop.permute.xlu1 %1703 }
 0x690   : > { %v1701_v27 = vpop.permute.xlu0 %1700  ;;  %3519 = vmatpush3.bf16.xpose.msra.mxu0 %v1807_v24  ;;  %v1721_v32 = vpack.c.bf16 %v1704_v25, %v1704_v25 }
 0x691   : > { %v1720_v29 = vpack.c.bf16 %v1701_v27, %v1701_v27  ;;  %3530 = vmatprep.subr.bf16.mxu0 %v4522_v61 }
 0x692   : > { %v1899_v36 = vsel %vm1756_vm6, %v1721_v32, 0 }
 0x693   : > { %v1853_v31 = vsel %vm1756_vm6, %v1720_v29, 0  ;;  %v1707_v33 = vpop.permute.xlu1 %1706 }
 0x694   : > { %v1671_v34 = vpop.permute.xlu0 %1670  ;;  %3525 = vmatpush3.bf16.xpose.msra.mxu1 %v1853_v31  ;;  %v1722_v37 = vpack.c.bf16 %v1707_v33, %v1707_v33 }
 0x695   : > { %3536 = vmatprep.subr.bf16.mxu1 %v4522_v61  ;;  %v1690_v40 = vpack.c.bf16 %v1671_v34, %v1671_v34 }
 0x696   : > { %v1945_v41 = vsel %vm1756_vm6, %v1722_v37, 0 }
 0x697   : > { %3521 = vmatmul.mubr.msk.bf16.vlgmr.msra.gmra.mrb[8].mxu0 %vm1756_vm6, %v1689_v35  ;;  %v1710_v38 = vpop.permute.xlu1 %1709 }
 0x698   : > { %v1674_v39 = vpop.permute.xlu0 %1673  ;;  %3531 = vmatpush3.bf16.xpose.msra.mxu0 %v1899_v36  ;;  %3532 = vmatprep.mubr.msk.bf16.mxu0 %vm4523_vm4, %v4522_v61  ;;  %v1723_v42 = vpack.c.bf16 %v1710_v38, %v1710_v38 }
 0x699   : > { %3542 = vmatprep.subr.bf16.mxu0 %v4522_v61  ;;  %v1691_v45 = vpack.c.bf16 %v1674_v39, %v1674_v39 }
 0x69a   : > { %v1991_v47 = vsel %vm1756_vm6, %v1723_v42, 0 }
 0x69b   : > { %3527 = vmatmul.mubr.msk.bf16.vlgmr.msra.gmra.mrb[8].mxu1 %vm1756_vm6, %v1690_v40  ;;  %v1713_v43 = vpop.permute.xlu1 %1712 }
 0x69c   : > { %v1677_v44 = vpop.permute.xlu0 %1676  ;;  %3537 = vmatpush3.bf16.xpose.msra.mxu1 %v1945_v41  ;;  %3538 = vmatprep.mubr.msk.bf16.mxu1 %vm4523_vm4, %v4522_v61  ;;  %v1724_v48 = vpack.c.bf16 %v1713_v43, %v1713_v43 }
 0x69d   : > { %3548 = vmatprep.subr.bf16.mxu1 %v4522_v61  ;;  %v1692_v51 = vpack.c.bf16 %v1677_v44, %v1677_v44 }
 0x69e   : > { %v2037_v53 = vsel %vm1756_vm6, %v1724_v48, 0 }
 0x69f   : > { %3533 = vmatmul.mubr.msk.bf16.vlgmr.msra.gmra.mrb[12].mxu0 %vm1756_vm6, %v1691_v45  ;;  %v1716_v50 = vpop.permute.xlu1 %1715 }
 0x6a0   : > { %v1680_v49 = vpop.permute.xlu0 %1679  ;;  %3543 = vmatpush3.bf16.xpose.msra.mxu0 %v1991_v47  ;;  %3544 = vmatprep.mubr.msk.bf16.mxu0 %vm4523_vm4, %v4522_v61  ;;  %v1725_v54 = vpack.c.bf16 %v1716_v50, %v1716_v50 }
 0x6a1   : > { %3554 = vmatprep.subr.bf16.mxu0 %v4522_v61  ;;  %v1693_v55 = vpack.c.bf16 %v1680_v49, %v1680_v49 }
 0x6a2   : > { %v2083_v58 = vsel %vm1756_vm6, %v1725_v54, 0 }
 0x6a3   : > { %3539 = vmatmul.mubr.msk.bf16.vlgmr.msra.gmra.mrb[12].mxu1 %vm1756_vm6, %v1692_v51  ;;  %v1686_v62 = vpop.permute.xlu1 %1685 }
 0x6a4   : > { %3549 = vmatpush3.bf16.xpose.msra.mxu1 %v2037_v53  ;;  %3550 = vmatprep.mubr.msk.bf16.mxu1 %vm4523_vm4, %v4522_v61  ;;  %v1683_v57 = vpop.permute.xlu0 %1682  ;;  %v1695_v63 = vpack.c.bf16 %v1686_v62, %v1686_v62 }
 0x6a5   : > { %3560 = vmatprep.subr.bf16.mxu1 %v4522_v61  ;;  %v1694_v59 = vpack.c.bf16 %v1683_v57, %v1683_v57 }
 0x6a7   : > { %3545 = vmatmul.mubr.msk.bf16.vlgmr.msra.gmra.mrb[16].mxu0 %vm1756_vm6, %v1693_v55 }
 0x6a8   : > { %3555 = vmatpush3.bf16.xpose.msra.mxu0 %v2083_v58  ;;  %3556 = vmatprep.mubr.msk.bf16.mxu0 %vm4523_vm4, %v4522_v61 }
 0x6a9   : > { %3566 = vmatprep.subr.bf16.mxu0 %v4522_v61 }
 0x6ab   : > { %3551 = vmatmul.mubr.msk.bf16.vlgmr.msra.gmra.mrb[16].mxu1 %vm1756_vm6, %v1694_v59 }
 0x6ac   : > { %3561 = vmatpush3.bf16.msra.mxu1 %v2227_v60  ;;  %3562 = vmatprep.mubr.msk.bf16.mxu1 %vm4523_vm4, %v4522_v61 }
 0x6ad   : > { %3572 = vmatprep.subr.bf16.mxu1 %v4522_v61 }
 0x6af   : > { %3557 = vmatmul.mubr.msk.bf16.vlgmr.msra.gmra.mrb[20].mxu0 %vm1756_vm6, %v1695_v63 }
 0x6b0   : > { %3568 = vmatprep.mubr.msk.bf16.mxu0 %vm4523_vm4, %v4522_v61 }
 0x6f7   : > { %v1797_v0 = vpop.f32.mrb[4].mxu1 }
 0x6f8   : > { %v3516_v2 = vpop.f32.mrb[5].mxu1  ;;  %v2126_v3 = vsel %vm2125_vm8, %v1797_v0, -inf }
 0x6f9   : > { %2127 = vmax.xlane.f32.xlu0 %v2126_v3  ;;  %v1800_v4 = vpop.f32.mrb[6].mxu1 }
 0x6fa   : > { %v3517_v5 = vpop.f32.mrb[7].mxu1 }
 0x76a   : > { %v1843_v6 = vpop.f32.mrb[8].mxu0 }
 0x76b   : > { %v3522_v7 = vpop.f32.mrb[9].mxu0  ;;  %v2129_v8 = vsel %vm2125_vm8, %v1843_v6, -inf }
 0x76c   : > { %2130 = vmax.xlane.f32.xlu1 %v2129_v8  ;;  %v1846_v9 = vpop.f32.mrb[10].mxu0 }
 0x76d   : > { %v3523_v10 = vpop.f32.mrb[11].mxu0 }
 0x76e   : > { %v1889_v11 = vpop.f32.mrb[8].mxu1 }
 0x76f   : > { %v3528_v12 = vpop.f32.mrb[9].mxu1  ;;  %v2132_v13 = vsel %vm2125_vm8, %v1889_v11, -inf }
 0x770   : > { %2133 = vmax.xlane.f32.xlu0 %v2132_v13  ;;  %v1892_v14 = vpop.f32.mrb[10].mxu1 }
 0x771   : > { %v3529_v15 = vpop.f32.mrb[11].mxu1 }
 0x772   : > { %v1935_v16 = vpop.f32.mrb[12].mxu0 }
 0x773   : > { %v3534_v17 = vpop.f32.mrb[13].mxu0  ;;  %v2135_v18 = vsel %vm2125_vm8, %v1935_v16, -inf }
 0x774   : > { %2136 = vmax.xlane.f32.xlu0 %v2135_v18  ;;  %v1938_v19 = vpop.f32.mrb[14].mxu0 }
 0x775   : > { %v3535_v20 = vpop.f32.mrb[15].mxu0 }
 0x776   : > { %v1981_v21 = vpop.f32.mrb[12].mxu1 }
 0x777   : > { %v3540_v22 = vpop.f32.mrb[13].mxu1  ;;  %v2138_v23 = vsel %vm2125_vm8, %v1981_v21, -inf }
 0x778   : > { %v1984_v24 = vpop.f32.mrb[14].mxu1  ;;  %2139 = vmax.xlane.f32.xlu1 %v2138_v23 }
 0x779   : > { %v3541_v25 = vpop.f32.mrb[15].mxu1 }
 0x77a   : > { %v2027_v26 = vpop.f32.mrb[16].mxu0 }
 0x77b   : > { %v3546_v27 = vpop.f32.mrb[17].mxu0  ;;  %v2141_v28 = vsel %vm2125_vm8, %v2027_v26, -inf }
 0x77c   : > { %2142 = vmax.xlane.f32.xlu0 %v2141_v28  ;;  %v2030_v29 = vpop.f32.mrb[18].mxu0 }
 0x77d   : > { %v3547_v30 = vpop.f32.mrb[19].mxu0 }
 0x77e   : > { %v2073_v31 = vpop.f32.mrb[16].mxu1 }
 0x77f   : > { %v3552_v32 = vpop.f32.mrb[17].mxu1  ;;  %v2144_v33 = vsel %vm2125_vm8, %v2073_v31, -inf }
 0x780   : > { %v2076_v34 = vpop.f32.mrb[18].mxu1  ;;  %2145 = vmax.xlane.f32.xlu1 %v2144_v33 }
 0x781   : > { %v3553_v35 = vpop.f32.mrb[19].mxu1 }
 0x782   : > { %v2119_v36 = vpop.f32.mrb[20].mxu0 }
 0x783   : > { %v3558_v37 = vpop.f32.mrb[21].mxu0  ;;  %v2147_v38 = vsel %vm2125_vm8, %v2119_v36, -inf }
 0x784   : > { %2148 = vmax.xlane.f32.xlu0 %v2147_v38  ;;  %v2122_v39 = vpop.f32.mrb[22].mxu0 }
 0x785   : > { %v3559_v40 = vpop.f32.mrb[23].mxu0 }
 0x786   : > { %v2128_v41 = vpop.xlane.xlu0 %2127 }
 0x787   : > { %v2150_v42 = vsub.f32 %v1797_v0, %v2128_v41 }
 0x789   : > { %v2158_v43 = vmul.f32 1.442695, %v2150_v42 }
 0x78b   : > { %3874 = vpow2.f32 %v2158_v43 }
 0x791   : > { %1727 = vrot.lane.b32.xlu1 %v5434_v52, %s4524_s4 }
 0x795   : > { %1733 = vrot.lane.b32.xlu1 %v5434_v52, %s4525_s9  ;;  %v5472_v44 = vpop.eup %3874 }
 0x796   : > { %v2174_v45 = vsel %vm2125_vm8, %v5472_v44, 0.0 }
 0x799   : > { %1736 = vrot.lane.b32.xlu1 %v5434_v52, %s4527_s10 }
 0x79a   : > { %1730 = vrot.lane.b32.xlu0 %v5434_v52, %s4526_s12 }
 0x7bd   : > { %2175 = vadd.xlane.f32.xlu1 %v2174_v45 }
 0x7ce   : > { %1739 = vrot.lane.b32.xlu1 %v5434_v52, %s4528_s21  ;;  %s5895_s21 = sld [smem:[#allocation42_spill]] }
 0x7d4   : > { %p3407_p12 = scmp.ne.s32.totalorder %s5895_s21, 3 }
 0x7d5   : > { %s5897_s13 = sld [smem:[#allocation80_spill]] (!%p3407_p12) }
 0x7f9   : > { %v2131_v46 = vpop.xlane.xlu1 %2130 }
 0x7fa   : > { %v2151_v47 = vsub.f32 %v1843_v6, %v2131_v46 }
 0x7fc   : > { %v2160_v48 = vmul.f32 1.442695, %v2151_v47 }
 0x7fd   : > { %v2134_v49 = vpop.xlane.xlu0 %2133 }
 0x7fe   : > { %3876 = vpow2.f32 %v2160_v48  ;;  %v2152_v50 = vsub.f32 %v1889_v11, %v2134_v49 }
 0x800   : > { %v2162_v51 = vmul.f32 1.442695, %v2152_v50 }
 0x801   : > { %v2137_v53 = vpop.xlane.xlu0 %2136 }
 0x802   : > { %3878 = vpow2.f32 %v2162_v51  ;;  %v2153_v54 = vsub.f32 %v1935_v16, %v2137_v53 }
 0x804   : > { %v2164_v55 = vmul.f32 1.442695, %v2153_v54 }
 0x805   : > { %v2140_v56 = vpop.xlane.xlu1 %2139 }
 0x806   : > { %3880 = vpow2.f32 %v2164_v55  ;;  %v2154_v57 = vsub.f32 %v1981_v21, %v2140_v56 }
 0x808   : > { %v5478_v58 = vpop.eup %3876  ;;  %v2166_v59 = vmul.f32 1.442695, %v2154_v57 }
 0x809   : > { %v2143_v60 = vpop.xlane.xlu0 %2142  ;;  %v2177_v62 = vsel %vm2125_vm8, %v5478_v58, 0.0 }
 0x80a   : > { %3882 = vpow2.f32 %v2166_v59  ;;  %v2155_v63 = vsub.f32 %v2027_v26, %v2143_v60  ;;  %2178 = vadd.xlane.f32.xlu0 %v2177_v62 }
 0x80c   : > { %v5482_v0 = vpop.eup %3878  ;;  %v2168_v2 = vmul.f32 1.442695, %v2155_v63 }
 0x80d   : > { %v2146_v3 = vpop.xlane.xlu1 %2145  ;;  %v2180_v4 = vsel %vm2125_vm8, %v5482_v0, 0.0 }
 0x80e   : > { %3884 = vpow2.f32 %v2168_v2  ;;  %v2156_v5 = vsub.f32 %v2073_v31, %v2146_v3  ;;  %2181 = vadd.xlane.f32.xlu1 %v2180_v4 }
 0x810   : > { %v5486_v6 = vpop.eup %3880  ;;  %v2170_v7 = vmul.f32 1.442695, %v2156_v5 }
 0x811   : > { %v1728_v8 = vpop.permute.xlu1 %1727  ;;  %v2149_v9 = vpop.xlane.xlu0 %2148  ;;  %v2183_v10 = vsel %vm2125_vm8, %v5486_v6, 0.0 }
 0x812   : > { %3886 = vpow2.f32 %v2170_v7  ;;  %v1749_v11 = vpack.c.bf16 %v1728_v8, %v1728_v8  ;;  %v2157_v12 = vsub.f32 %v2119_v36, %v2149_v9  ;;  %2184 = vadd.xlane.f32.xlu0 %v2183_v10 }
 0x814   : > { %v5490_v13 = vpop.eup %3882  ;;  %v2273_v14 = vsel %vm2225_vm7, %v1749_v11, 0  ;;  %v2172_v15 = vmul.f32 1.442695, %v2157_v12 }
 0x815   : > { %3567 = vmatpush3.bf16.msra.mxu0 %v2273_v14  ;;  %v2186_v16 = vsel %vm2125_vm8, %v5490_v13, 0.0  ;;  %v1734_v23 = vpop.permute.xlu1 %1733  ;;  %v1731_v26 = vpop.permute.xlu0 %1730 }
 0x816   : > { %3888 = vpow2.f32 %v2172_v15  ;;  %2187 = vadd.xlane.f32.xlu1 %v2186_v16  ;;  %3578 = vmatprep.subr.bf16.mxu0 %v4522_v61  ;;  %v1750_v28 = vpack.c.bf16 %v1731_v26, %v1731_v26  ;;  %v1751_v36 = vpack.c.bf16 %v1734_v23, %v1734_v23  ;;  %v3869_v23 = vld [vmem:[%s5295_s26] sm:$0xff]  }
 0x818   : > { %v5496_v17 = vpop.eup %3884  ;;  %v2319_v31 = vsel %vm2225_vm7, %v1750_v28, 0  ;;  %v2365_v41 = vsel %vm2225_vm7, %v1751_v36, 0  ;;  %v3870_v28 = vld [vmem:[%s5295_s26 + $0x8] sm:$0xff]   ;;  %s4537_s26 = smov 28  }
 0x819   : > { %v2189_v18 = vsel %vm2125_vm8, %v5496_v17, 0.0  ;;  %v1737_v24 = vpop.permute.xlu1 %1736 }
 0x81a   : > { %2190 = vadd.xlane.f32.xlu0 %v2189_v18  ;;  %v1752_v42 = vpack.c.bf16 %v1737_v24, %v1737_v24 }
 0x81c   : > { %v5500_v19 = vpop.eup %3886  ;;  %v2411_v47 = vsel %vm2225_vm7, %v1752_v42, 0 }
 0x81d   : > { %v2192_v20 = vsel %vm2125_vm8, %v5500_v19, 0.0 }
 0x81e   : > { %2193 = vadd.xlane.f32.xlu0 %v2192_v20 }
 0x820   : > { %v5504_v21 = vpop.eup %3888 }
 0x821   : > { %v2195_v22 = vsel %vm2125_vm8, %v5504_v21, 0.0 }
 0x822   : > { %2196 = vadd.xlane.f32.xlu0 %v2195_v22 }
 0x827   : > { %1742 = vrot.lane.b32.xlu1 %v5434_v52, %s4529_s3 }
 0x838   : > { %1745 = vrot.lane.b32.xlu0 %v5434_v52, %s4530_s22 }
 0x84a   : > { %v2176_v25 = vpop.xlane.xlu1 %2175 }
 0x84b   : > { %3890 = vrcp.f32 %v2176_v25 }
 0x84e   : > { %v1740_v52 = vpop.permute.xlu1 %1739 }
 0x84f   : > { %v1753_v48 = vpack.c.bf16 %v1740_v52, %v1740_v52 }
 0x851   : > { %v2457_v55 = vsel %vm2225_vm7, %v1753_v48, 0 }
 0x855   : > { %v3891_v27 = vpop.eup %3890 }
 0x856   : > { %v2206_v29 = vmul.f32 %v3891_v27, %v5472_v44 }
 0x858   : > { %v2214_v30 = vpack.c.bf16 %v2206_v29, %v2206_v29 }
 0x85a   : > { %3563 = vmatmul.mubr.msk.bf16.vlgmr.msra.gmra.mrb[20].mxu1 %vm2125_vm8, %v2214_v30 }
 0x85b   : > { %3573 = vmatpush3.bf16.msra.mxu1 %v2319_v31  ;;  %3574 = vmatprep.mubr.msk.bf16.mxu1 %vm4523_vm4, %v4522_v61 }
 0x85c   : > { %3584 = vmatprep.subr.bf16.mxu1 %v4522_v61 }
 0x897   : > { %v2179_v32 = vpop.xlane.xlu0 %2178 }
 0x898   : > { %3892 = vrcp.f32 %v2179_v32 }
 0x89b   : > { %v2182_v33 = vpop.xlane.xlu1 %2181 }
 0x89c   : > { %3894 = vrcp.f32 %v2182_v33 }
 0x89f   : > { %v2185_v34 = vpop.xlane.xlu0 %2184 }
 0x8a0   : > { %3896 = vrcp.f32 %v2185_v34 }
 0x8a2   : > { %v3893_v35 = vpop.eup %3892 }
 0x8a3   : > { %v2207_v37 = vmul.f32 %v3893_v35, %v5478_v58  ;;  %v2188_v38 = vpop.xlane.xlu1 %2187 }
 0x8a4   : > { %3898 = vrcp.f32 %v2188_v38 }
 0x8a5   : > { %v2215_v39 = vpack.c.bf16 %v2207_v37, %v2207_v37 }
 0x8a6   : > { %v3895_v40 = vpop.eup %3894 }
 0x8a7   : > { %v2208_v43 = vmul.f32 %v3895_v40, %v5482_v0  ;;  %3569 = vmatmul.mubr.msk.bf16.vlgmr.msra.gmra.mrb[24].mxu0 %vm2125_vm8, %v2215_v39  ;;  %v2191_v44 = vpop.xlane.xlu0 %2190  ;;  %v1743_v51 = vpop.permute.xlu1 %1742 }
 0x8a8   : > { %3579 = vmatpush3.bf16.msra.mxu0 %v2365_v41  ;;  %3900 = vrcp.f32 %v2191_v44  ;;  %3580 = vmatprep.mubr.msk.bf16.mxu0 %vm4523_vm4, %v4522_v61  ;;  %v1754_v57 = vpack.c.bf16 %v1743_v51, %v1743_v51 }
 0x8a9   : > { %v2216_v45 = vpack.c.bf16 %v2208_v43, %v2208_v43  ;;  %3590 = vmatprep.subr.bf16.mxu0 %v4522_v61 }
 0x8aa   : > { %v3897_v46 = vpop.eup %3896  ;;  %v2503_v62 = vsel %vm2225_vm7, %v1754_v57, 0 }
 0x8ab   : > { %v2209_v49 = vmul.f32 %v3897_v46, %v5486_v6  ;;  %3575 = vmatmul.mubr.msk.bf16.vlgmr.msra.gmra.mrb[24].mxu1 %vm2125_vm8, %v2216_v45  ;;  %v2194_v50 = vpop.xlane.xlu0 %2193 }
 0x8ac   : > { %3585 = vmatpush3.bf16.msra.mxu1 %v2411_v47  ;;  %3902 = vrcp.f32 %v2194_v50  ;;  %3586 = vmatprep.mubr.msk.bf16.mxu1 %vm4523_vm4, %v4522_v61 }
 0x8ad   : > { %v2217_v53 = vpack.c.bf16 %v2209_v49, %v2209_v49  ;;  %3596 = vmatprep.subr.bf16.mxu1 %v4522_v61 }
 0x8ae   : > { %v3899_v54 = vpop.eup %3898 }
 0x8af   : > { %v2210_v56 = vmul.f32 %v3899_v54, %v5490_v13  ;;  %3581 = vmatmul.mubr.msk.bf16.vlgmr.msra.gmra.mrb[28].mxu0 %vm2125_vm8, %v2217_v53  ;;  %v2197_v58 = vpop.xlane.xlu0 %2196 }
 0x8b0   : > { %3591 = vmatpush3.bf16.msra.mxu0 %v2457_v55  ;;  %3904 = vrcp.f32 %v2197_v58  ;;  %3592 = vmatprep.mubr.msk.bf16.mxu0 %vm4523_vm4, %v4522_v61 }
 0x8b1   : > { %v2218_v59 = vpack.c.bf16 %v2210_v56, %v2210_v56  ;;  %3602 = vmatprep.subr.bf16.mxu0 %v4522_v61 }
 0x8b2   : > { %v3901_v60 = vpop.eup %3900 }
 0x8b3   : > { %v2211_v63 = vmul.f32 %v3901_v60, %v5496_v17  ;;  %3587 = vmatmul.mubr.msk.bf16.vlgmr.msra.gmra.mrb[28].mxu1 %vm2125_vm8, %v2218_v59  ;;  %v1746_v0 = vpop.permute.xlu0 %1745  ;;  %v3392_v60 = vld [vmem:[%s5888_s28] ss:$0 sm:$0xff] }
 0x8b4   : > { %3597 = vmatpush3.bf16.msra.mxu1 %v2503_v62  ;;  %v1755_v2 = vpack.c.bf16 %v1746_v0, %v1746_v0  ;;  %3598 = vmatprep.mubr.msk.bf16.mxu1 %vm4523_vm4, %v4522_v61 }
 0x8b5   : > { %v2219_v3 = vpack.c.bf16 %v2211_v63, %v2211_v63  ;;  %3608 = vmatprep.subr.bf16.mxu1 %v4522_v61 }
 0x8b6   : > { %v3903_v4 = vpop.eup %3902  ;;  %v2549_v5 = vsel %vm2225_vm7, %v1755_v2, 0 }
 0x8b7   : > { %v2212_v6 = vmul.f32 %v3903_v4, %v5500_v19  ;;  %3593 = vmatmul.mubr.msk.bf16.vlgmr.msra.gmra.mrb[32].mxu0 %vm2125_vm8, %v2219_v3 }
 0x8b8   : > { %3603 = vmatpush3.bf16.msra.mxu0 %v2549_v5  ;;  %3604 = vmatprep.mubr.msk.bf16.mxu0 %vm4523_vm4, %v4522_v61 }
 0x8b9   : > { %v2220_v7 = vpack.c.bf16 %v2212_v6, %v2212_v6  ;;  %3616 = vmatprep.subr.bf16.mxu0 %v4522_v61 }
 0x8ba   : > { %v3905_v8 = vpop.eup %3904 }
 0x8bb   : > { %v2213_v9 = vmul.f32 %v3905_v8, %v5504_v21  ;;  %3599 = vmatmul.mubr.msk.bf16.vlgmr.msra.gmra.mrb[32].mxu1 %vm2125_vm8, %v2220_v7 }
 0x8bc   : > { %3612 = vmatprep.mubr.msk.bf16.mxu1 %vm4523_vm4, %v4522_v61  ;;  %3609 = vmatpush3.bf16.msra.mxu1 %v3869_v23 }
 0x8bd   : > { %v2221_v10 = vpack.c.bf16 %v2213_v9, %v2213_v9  ;;  %3610 = vmatprep.subr.bf16.mxu1 %v4522_v61 }
 0x8bf   : > { %3605 = vmatmul.mubr.msk.bf16.vlgmr.msra.gmra.mrb[36].mxu0 %vm2125_vm8, %v2221_v10 }
 0x8c0   : > { %3620 = vmatprep.mubr.msk.bf16.mxu0 %vm4523_vm4, %v4522_v61  ;;  %3611 = vmatpush3.bf16.msra.mxu1 %v3870_v28 }
 0x8c1   : > { %3624 = vmatprep.subr.bf16.mxu1 %v4522_v61 }
 0x92d   : > { %v2263_v11 = vpop.f32.mrb[20].mxu1 }
 0x92e   : > { %v3564_v12 = vpop.f32.mrb[21].mxu1 }
 0x92f   : > { %v2266_v13 = vpop.f32.mrb[22].mxu1  ;;  %v3872_v12 = vld [vmem:[%s5889_s5 + $0x8] sm:$0xff]  }
 0x930   : > { %v3565_v14 = vpop.f32.mrb[23].mxu1 }
 0x97a   : > { %v2309_v15 = vpop.f32.mrb[24].mxu0 }
 0x97b   : > { %2592 = vrot.lane.b32.xlu1 %v2309_v15, %s4531_s17  ;;  %v3570_v16 = vpop.f32.mrb[25].mxu0 }
 0x97c   : > { %v2312_v17 = vpop.f32.mrb[26].mxu0  ;;  %v3396_v16 = vld [vmem:[%s1114_s16] ss:$0 sm:$0xff] }
 0x97d   : > { %v3571_v18 = vpop.f32.mrb[27].mxu0 }
 0x97e   : > { %v2355_v19 = vpop.f32.mrb[24].mxu1  ;;  %v3397_v18 = vld [vmem:[%s1272_s0] ss:$0 sm:$0xff] }
 0x97f   : > { %2596 = vrot.lane.b32.xlu0 %v2355_v19, %s4532_s18  ;;  %v3576_v20 = vpop.f32.mrb[25].mxu1 }
 0x980   : > { %v2358_v21 = vpop.f32.mrb[26].mxu1 }
 0x981   : > { %v3577_v22 = vpop.f32.mrb[27].mxu1 }
 0x982   : > { %v2401_v24 = vpop.f32.mrb[28].mxu0  ;;  %v3398_v22 = vld [vmem:[%s5891_s30] ss:$0 sm:$0xff] }
 0x983   : > { %2600 = vrot.lane.b32.xlu1 %v2401_v24, %s4533_s23  ;;  %v3582_v25 = vpop.f32.mrb[29].mxu0 }
 0x984   : > { %v2404_v26 = vpop.f32.mrb[30].mxu0 }
 0x985   : > { %v3583_v27 = vpop.f32.mrb[31].mxu0 }
 0x986   : > { %v2447_v29 = vpop.f32.mrb[28].mxu1 }
 0x987   : > { %2604 = vrot.lane.b32.xlu0 %v2447_v29, %s4534_s27  ;;  %v3588_v30 = vpop.f32.mrb[29].mxu1 }
 0x988   : > { %v2450_v31 = vpop.f32.mrb[30].mxu1  ;;  %v3402_v30 = vld [vmem:[%s1269_s8] ss:$0 sm:$0xff] }
 0x989   : > { %v3589_v52 = vpop.f32.mrb[31].mxu1 }
 0x98a   : > { %v2493_v32 = vpop.f32.mrb[32].mxu0 }
 0x98b   : > { %2608 = vrot.lane.b32.xlu1 %v2493_v32, %s4535_s14  ;;  %v3594_v33 = vpop.f32.mrb[33].mxu0 }
 0x98c   : > { %v2496_v34 = vpop.f32.mrb[34].mxu0 }
 0x98d   : > { %v3595_v35 = vpop.f32.mrb[35].mxu0 }
 0x98e   : > { %v2539_v36 = vpop.f32.mrb[32].mxu1 }
 0x98f   : > { %2612 = vrot.lane.b32.xlu0 %v2539_v36, %s4536_s1  ;;  %v3600_v37 = vpop.f32.mrb[33].mxu1 }
 0x990   : > { %v2542_v38 = vpop.f32.mrb[34].mxu1 }
 0x991   : > { %v3601_v39 = vpop.f32.mrb[35].mxu1 }
 0x992   : > { %v2585_v40 = vpop.f32.mrb[36].mxu0 }
 0x993   : > { %2616 = vrot.lane.b32.xlu1 %v2585_v40, %s4537_s26  ;;  %v3606_v41 = vpop.f32.mrb[37].mxu0 }
 0x994   : > { %v2588_v42 = vpop.f32.mrb[38].mxu0 }
 0x995   : > { %v3607_v43 = vpop.f32.mrb[39].mxu0 }
 0x9ed   : > { %v2593_v44 = vpop.permute.xlu1 %2592 }
 0x9ee   : > { %v2619_v48 = vsel %vm1756_vm6, %v2263_v11, %v2593_v44  ;;  %v3871_v11 = vld [vmem:[%s5889_s5] sm:$0xff]  }
 0x9ef   : > { %3617 = vmatpush3.bf16.msra.mxu0 %v3871_v11 }
 0x9f0   : > { %3618 = vmatprep.subr.bf16.mxu0 %v4522_v61 }
 0x9f1   : > { %v2597_v45 = vpop.permute.xlu0 %2596 }
 0x9f2   : > { %v2620_v49 = vsel %vm2125_vm8, %v2619_v48, %v2597_v45  ;;  %v3406_v48 = vld [vmem:[%s1278_s24] ss:$0 sm:$0xff]  ;;  %s5896_s24 = sld [smem:[#allocation79_spill]] (!%p3407_p12) }
 0x9f3   : > { %3619 = vmatpush3.bf16.msra.mxu0 %v3872_v12 }
 0x9f5   : > { %v2601_v46 = vpop.permute.xlu1 %2600 }
 0x9f6   : > { %v2622_v51 = vsel %vm2621_vm9, %v2620_v49, %v2601_v46  ;;  %v3405_v46 = vld [vmem:[%s1275_s29] ss:$0 sm:$0xff] }
 0x9f9   : > { %v2605_v47 = vpop.permute.xlu0 %2604 }
 0x9fa   : > { %v2624_v54 = vsel %vm2623_vm10, %v2622_v51, %v2605_v47 }
 0x9fd   : > { %v2609_v50 = vpop.permute.xlu1 %2608 }
 0x9fe   : > { %v2626_v55 = vsel %vm2625_vm11, %v2624_v54, %v2609_v50 }
 0xa01   : > { %v2613_v53 = vpop.permute.xlu0 %2612 }
 0xa02   : > { %v2628_v56 = vsel %vm2627_vm12, %v2626_v55, %v2613_v53 }
 0xa05   : > { %v2617_v57 = vpop.permute.xlu1 %2616 }
 0xa06   : > { %v2630_v58 = vsel %vm2629_vm13, %v2628_v56, %v2617_v57 }
 0xa07   : > { %v2635_v59 = vpack.c.bf16 %v2630_v58, %v2630_v58 }
 0xa09   : > { %3613 = vmatmul.mubr.msk.bf16.vlgmr.msra.gmra.mrb[36].mxu1 %vm1496_vm5, %v2635_v59 }
 0xa0a   : > { %3626 = vmatprep.mubr.msk.bf16.mxu1 %vm4523_vm4, %v4522_v61  ;;  %v3873_v61 = vld [vmem:[%s5331_s7] sm:$0xff]  }
 0xa0b   : > { %3625 = vmatpush3.bf16.msra.mxu1 %v3873_v61 }
 0xadc   : > { %v2692_v62 = vpop.f32.mrb[36].mxu1 }
 0xadd   : > { %v2693_v63 = vadd.f32 %v3392_v60, %v2692_v62  ;;  %v3614_v0 = vpop.f32.mrb[37].mxu1 }
 0xade   : > { %v2695_v2 = vpop.f32.mrb[38].mxu1 }
 0xadf   : > { %v3615_v3 = vpop.f32.mrb[39].mxu1  ;;  %v2698_v4 = vadd.f32 %v2693_v63, %v5371_v1  ;;  %v3408_v63 = vld [vmem:[%s5896_s24] ss:$0 sm:$0xff] (!%p3407_p12) }
 0xae0   : > { %v3409_v2 = vld [vmem:[%s5897_s13] ss:$0 sm:$0xff] (!%p3407_p12) }
 0xae1   : > { %v2701_v5 = vsel %vm1496_vm5, %v2698_v4, 0.0 }
 0xae2   : > { %2702 = vadd.xlane.f32.xlu0 %v2701_v5 }
 0xb6f   : > { %v2703_v6 = vpop.xlane.xlu0 %2702 }
 0xb70   : > { %v2705_v7 = vmul.f32 0.03125, %v2703_v6 }
 0xb72   : > { %v2706_v8 = vsub.f32 %v2698_v4, %v2705_v7 }
 0xb74   : > { %v2707_v9 = vmul.f32 %v2706_v8, %v2706_v8 }
 0xb76   : > { %v2708_v10 = vsel %vm1496_vm5, %v2707_v9, 0.0 }
 0xb77   : > { %2709 = vadd.xlane.f32.xlu1 %v2708_v10 }
 0xc04   : > { %v2710_v1 = vpop.xlane.xlu1 %2709 }
 0xc05   : > { %v2711_v13 = vmul.f32 0.03125, %v2710_v1 }
 0xc07   : > { %v2712_v14 = vadd.f32 1e-05, %v2711_v13 }
 0xc09   : > { %3906 = vrsqrt.f32 %v2712_v14 }
 0xc13   : > { %v3907_v15 = vpop.eup %3906 }
 0xc14   : > { %v2714_v17 = vmul.f32 %v3907_v15, %v2706_v8 }
 0xc16   : > { %v2721_v19 = vmul.f32 %v3396_v16, %v2714_v17 }
 0xc18   : > { %v2728_v20 = vadd.f32 %v3397_v18, %v2721_v19 }
 0xc1a   : > { %v2733_v21 = vpack.c.bf16 %v2728_v20, %v2728_v20 }
 0xc1c   : > { %3621 = vmatmul.mubr.msk.bf16.vlgmr.msra.gmra.mrb[40].mxu0 %vm1496_vm5, %v2733_v21 }
 0xcef   : > { %v2790_v23 = vpop.f32.mrb[40].mxu0 }
 0xcf0   : > { %v2791_v24 = vadd.f32 %v3398_v22, %v2790_v23  ;;  %v3622_v25 = vpop.f32.mrb[41].mxu0 }
 0xcf1   : > { %v2793_v26 = vpop.f32.mrb[42].mxu0 }
 0xcf2   : > { %v2796_v27 = vmax.f32 %v2791_v24, 0.0  ;;  %v3623_v28 = vpop.f32.mrb[43].mxu0 }
 0xcf4   : > { %v2799_v29 = vpack.c.bf16 %v2796_v27, %v2796_v27 }
 0xcf6   : > { %3627 = vmatmul.mubr.msk.bf16.vlgmr.msra.gmra.mrb[40].mxu1 %vm2623_vm10, %v2799_v29 }
 0xdc9   : > { %v2850_v31 = vpop.f32.mrb[40].mxu1 }
 0xdca   : > { %v2851_v52 = vadd.f32 %v3402_v30, %v2850_v31  ;;  %v3628_v32 = vpop.f32.mrb[41].mxu1 }
 0xdcb   : > { %v2853_v33 = vpop.f32.mrb[42].mxu1 }
 0xdcc   : > { %v3629_v34 = vpop.f32.mrb[43].mxu1  ;;  %v2856_v35 = vadd.f32 %v2851_v52, %v2728_v20 }
 0xdce   : > { %v2859_v36 = vsel %vm1496_vm5, %v2856_v35, 0.0 }
 0xdcf   : > { %2860 = vadd.xlane.f32.xlu0 %v2859_v36 }
 0xe5c   : > { %v2861_v37 = vpop.xlane.xlu0 %2860 }
 0xe5d   : > { %v2862_v38 = vmul.f32 0.03125, %v2861_v37 }
 0xe5f   : > { %v2863_v39 = vsub.f32 %v2856_v35, %v2862_v38 }
 0xe61   : > { %v2864_v40 = vmul.f32 %v2863_v39, %v2863_v39 }
 0xe63   : > { %v2865_v41 = vsel %vm1496_vm5, %v2864_v40, 0.0 }
 0xe64   : > { %2866 = vadd.xlane.f32.xlu0 %v2865_v41 }
 0xef1   : > { %v2867_v42 = vpop.xlane.xlu0 %2866 }
 0xef2   : > { %v2868_v43 = vmul.f32 0.03125, %v2867_v42 }
 0xef4   : > { %v2869_v44 = vadd.f32 1e-05, %v2868_v43 }
 0xef6   : > { %3908 = vrsqrt.f32 %v2869_v44 }
 0xf00   : > { %v3909_v45 = vpop.eup %3908 }
 0xf01   : > { %v2871_v47 = vmul.f32 %v3909_v45, %v2863_v39  ;;  %2890 = sbr.rel (%p3407_p12) target bundleno = 4161 (0x1041), region = 188 }
 0xf03   : > { %v2878_v49 = vmul.f32 %v3405_v46, %v2871_v47 }
 0xf05   : > { %v2885_v50 = vadd.f32 %v3406_v48, %v2878_v49 }
 0xf07   : > { %2886 = vst.msk [vmem:[#allocation2] sm:$0xff] %vm1496_vm5, %v2885_v50  ;;  %v2893_v51 = vsel (!%p3407_p12), %vm1496_vm5, %v2885_v50, 0.0 }
 0xf08   : > { %2894 = vadd.xlane.f32.xlu0 %v2893_v51 }
 0xf95   : > { %v2895_v53 = vpop.xlane.xlu0 %2894 }
 0xf96   : > { %v2896_v54 = vmul.f32 0.03125, %v2895_v53 }
 0xf98   : > { %v2897_v55 = vsub.f32 %v2885_v50, %v2896_v54 }
 0xf9a   : > { %v2898_v56 = vmul.f32 %v2897_v55, %v2897_v55 }
 0xf9c   : > { %v2899_v57 = vsel %vm1496_vm5, %v2898_v56, 0.0 }
 0xf9d   : > { %2900 = vadd.xlane.f32.xlu0 %v2899_v57 }
0x102a   : > { %v2901_v58 = vpop.xlane.xlu0 %2900 }
0x102b   : > { %v2902_v59 = vmul.f32 0.03125, %v2901_v58 }
0x102d   : > { %v2903_v60 = vadd.f32 1e-05, %v2902_v59 }
0x102f   : > { %3910 = vrsqrt.f32 %v2903_v60 }
0x1039   : > { %v3911_v62 = vpop.eup %3910 }
0x103a   : > { %v2905_v0 = vmul.f32 %v3911_v62, %v2897_v55 }
0x103c   : > { %v2912_v3 = vmul.f32 %v3408_v63, %v2905_v0 }
0x103e   : > { %v2919_v4 = vadd.f32 %v3409_v2, %v2912_v3 }
0x1040   : > { %2920 = vst.msk [vmem:[%s5352_s25] sm:$0xff] %vm1496_vm5, %v2919_v4 }
0x1041 PF: > { %s5898_s17 = sld [smem:[#allocation43_spill]]  ;;  %s5899_s18 = sld [smem:[#allocation52_spill]] }
0x1042   : > { %s5900_s1 = sld [smem:[#allocation81_spill]]  ;;  %s2935_s5 = sshll.u32 %s5352_s25, 4  ;;  %s2936_s5 = int_to_ptr.vmem [resolvable:$true] %s2935_s5 }
0x1043   : > { %s2922_s11 = scalar_lea.sflag [#allocation5], %s5253_s20  ;;  %s4350_s19 = scalar_lea.vmem %s2936_s5, 128 }
0x1044   : > { %p4351_p1 = scmp.ne.s32.totalorder %s2936_s5, %s4350_s19  ;;  %s4538_s6 = smov [#allocation27]  }
0x1045   : > { %s4354_s30 = sshll.u32 %s4538_s6, 4  ;;  %s4355_s30 = int_to_ptr.vmem [resolvable:$false] %s4354_s30 }
0x1046   : > { %s4356_s16 = scalar_lea.vmem %s4355_s30, 256  ;;  %p4357_p9 = scmp.lt.s32.totalorder %s2936_s5, %s4355_s30 }
0x1047   : > { %s3411_s23 = sshll.u32 %s5898_s17, 7  ;;  %p5902_p2 = scmp.ne.s32.totalorder %s5899_s18, 0 }
0x1048   : > { %s5901_s28 = smov %s5900_s1  ;;  %s5619_s26 = scalar_lea.hbm %s5900_s1, %s3411_s23 }
0x1049   : > { %p4352_p10 = pnand %p4351_p1, %p5902_p2  ;;  %p4358_p7 = scmp.lt.s32.totalorder %s4356_s16, %s4350_s19 }
0x104b   : > { %p4353_p5 = pneg %p4352_p10  ;;  %p4359_p6 = por %p4358_p7, %p4357_p9 }
0x104d   : > { %p4360_p11 = pnand %p4359_p6, %p4353_p5 }
0x104f   : > { %4363 = shalt.err (!%p4360_p11)
}
0x1050   : > { %s4364_s20 = scalar_lea.hbm %s5619_s26, 128  ;;  %s4368_s4 = scalar_lea.hbm %s5901_s28, 256 }
0x1051   : > { %p4365_p8 = scmp.ne.s32.totalorder %s5619_s26, %s4364_s20  ;;  %p4369_p4 = scmp.lt.u32.totalorder %s5619_s26, %s5901_s28 }
0x1052   : > { %p4370_p0 = scmp.lt.u32.totalorder %s4368_s4, %s4364_s20  ;;  %p4372_p1 = scmp.lt.u32.totalorder %s4364_s20, %s5619_s26 }
0x1053   : > { %p4366_p13 = pnand %p4365_p8, %p5902_p2 }
0x1054   : > { %p4371_p12 = por %p4370_p0, %p4369_p4 }
0x1055   : > { %p4367_p3 = pneg %p4366_p13 }
0x1056   : > { %p4373_p10 = por %p4372_p1, %p4371_p12 }
0x1058   : > { %p4374_p5 = pnand %p4373_p10, %p4367_p3 }
0x105a   : > { %4377 = shalt.err (!%p4374_p5)
}
0x105b   : > { %3672 = dma.vmem_to_hbm [thread:$0]  (%p5902_p2), %s2936_s5, 128, %s5619_s26, %s2922_s11  }
0x105c PF: > { %s5903_s8 = sld [smem:[#allocation46_spill]]  ;;  %s5904_s9 = sld [smem:[#allocation39_spill]] }
0x105d   : > { %s5905_s12 = sld [smem:[#allocation54_spill]] }
0x1062   : > { %p3738_p9 = scmp.ge.s32.totalorder %s5903_s8, 2  ;;  %s2947_s10 = sand.u32 1, %s5904_s9  }
0x1063   : > { %p5906_p7 = scmp.ne.s32.totalorder %s5905_s12, 0  ;;  %s2948_s21 = scalar_lea.sflag [#allocation5], %s2947_s10 }
0x1065   : > { %p3722_p6 = pnand %p3738_p9, %p5906_p7 }
0x1067   : > { %4455 = dma.done.wait (!%p3722_p6), %s2948_s21, 128  }
0x1068   : > { %4457 = vsyncadd (!%p3722_p6), %s2948_s21, 4294967168  ;;  %s56_s4 = sadd.s32 1, %s5903_s8   ;;  %s5907_s29 = sld [smem:[#allocation37_spill]] }
0x1069   : > { %p53_p11 = scmp.ge.s32.totalorder %s56_s4, 10   ;;  %s5908_s2 = sld [smem:[#allocation38_spill]] }
0x106a   : > { %s5909_s6 = sld [smem:[#allocation51_spill]]  ;;  %s5910_s30 = sld [smem:[#allocation40_spill]] }
0x106b   : > { %s5911_s7 = sld [smem:[#allocation41_spill]]  ;;  %s5912_s3 = sld [smem:[#allocation53_spill]] }
0x106c   : > { %s5913_s26 = sld [smem:[#allocation44_spill]]  ;;  %s5914_s1 = sld [smem:[#allocation45_spill]] }
0x106d   : > { %s5915_s8 = sld [smem:[#allocation49_spill]]  ;;  %s5916_s27 = sld [smem:[#allocation50_spill]] }
0x106e   :  { %55 = sbr.rel (!%p53_p11) target bundleno = 47 (0x2f), region = 317 }
0x1075   :  { %2953 = vsyncpa [#allocation4], 1 }
0x1076   :  { %2955 = vsyncpa [#allocation4 + $0x1], 1 }
0x1077   :  { %2956 = vsyncpa [#allocation7], 1 }
0x1078   :  { %2957 = vsyncpa [#allocation10], 1 }
0x1079   :  { %2958 = vsyncpa [#allocation13], 1 }
0x107a   :  { %2959 = vsyncpa [#allocation16], 1 }
0x107b   :  { %2961 = vsyncpa [#allocation16 + $0x1], 1 }
0x107c   :  { %2962 = vsyncpa [#allocation19], 1 }
0x107d   :  { %2964 = vsyncpa [#allocation19 + $0x1], 1 }
0x107e   :  { %2965 = vsyncpa [#allocation22], 1 }
0x107f   :  { %2967 = vsyncpa [#allocation22 + $0x1], 1 }
0x1080   :  { %2968 = vsyncpa [#allocation25], 1 }
0x1081   :  { %2970 = vsyncpa [#allocation25 + $0x1], 1 }
0x1082   :  { %2971 = vsyncpa [#allocation5], 1 }
0x1083   :  { %2973 = vsyncpa [#allocation5 + $0x1], 1 }

</bundles_post_ra>
